<compile_context>
chip_gen: v7x
topology: tpu7x:2x2x1
jax: 0.10.0
libtpu: 0.0.40
codegen_flags: <defaults>
</compile_context>

<pallas_src>
import functools

import jax
import jax.numpy as jnp
from jax import lax
from jax.experimental import pallas as pl
from jax.experimental.pallas import tpu as pltpu


_LAYER_CFG = [
    # (in_ch, out_ch, stride)
    (1, 4, 2),
    (4, 8, 2),
    (8, 16, 1),
    (16, 1, 1),
]

_EPS = 1e-5


def _out_dim(n, s):
    # kernel=3, padding=1
    return (n + 2 - 3) // s + 1


def _zero_idx(*_, nd):
    return (0,) * nd


# ----------------------------------------------------------------------------
# Single fused Pallas kernel: all 4 conv blocks for the whole batch, no grid.
# ----------------------------------------------------------------------------
def _convnet_kernel(x_ref, *refs):
    o_ref = refs[-1]
    prm = refs[:-1]                      # (S_cat, T, shift) x 4 layers

    a = x_ref[...]                       # (N*D, H*W*Cin) f32
    for l in range(len(_LAYER_CFG)):
        s_ref, t_ref, sh_ref = prm[3 * l:3 * l + 3]

        # One matmul selects all three depth taps (stride + zero pad on depth,
        # block-diagonal over batch).  Exact 0/1 selection -> keep f32.
        rows_all = jnp.dot(s_ref[...], a, preferred_element_type=jnp.float32)
        nod = rows_all.shape[0] // 3     # rows per tap (= N * OD), 8-aligned

        acc = None
        for kd in range(3):              # the three depth taps of the 3x3x3 kernel
            # 8-aligned f32 slice, cast to bf16 only for the MXU operand.
            rows_kd = rows_all[kd * nod:(kd + 1) * nod].astype(jnp.bfloat16)
            # H/W im2col + stride + pad + conv weights + BN scale folded into T[kd].
            part = jnp.dot(rows_kd, t_ref[kd],
                           preferred_element_type=jnp.float32)
            acc = part if acc is None else acc + part   # MRB-friendly on v7x

        # Fused conv-bias + BatchNorm(eval) shift + ReLU epilogue (f32 VPU).
        a = jnp.maximum(acc + sh_ref[...], 0.0)

    o_ref[...] = a.astype(o_ref.dtype)


# ----------------------------------------------------------------------------
# Parameter folding (trace-time, outside the kernel): conv weights -> Toeplitz.
# ----------------------------------------------------------------------------
def prepare_kernel_params(params, batch, in_spatial=(16, 16, 16)):
    """Fold torch-shaped per-layer params into the matrices the kernel consumes.

    Returns a flat list [S1, T1, shift1, S2, ...] where for layer l:
      S     (3*N*OD, N*D)  f32   depth-tap selection, block-diag over batch,
                                 three taps stacked along rows
      T     (3, H*W*Cin, OH*OW*Cout)  bf16   H/W im2col Toeplitz x conv weights
                                            x BN scale, one slab per depth tap
      shift (1, OH*OW*Cout) f32  conv bias + BN shift tiled over output lanes
    """
    packed = []
    D, H, W = in_spatial
    eye_n = jnp.eye(batch, dtype=jnp.float32)

    for p, (cin, cout, s) in zip(params, _LAYER_CFG):
        OD, OH, OW = _out_dim(D, s), _out_dim(H, s), _out_dim(W, s)

        def taps(o, n, s=s):
            # taps[k, o_idx, n_idx] == 1  iff  n_idx == s*o_idx + k - 1
            # (out-of-range indices -> all-zero rows == zero padding)
            idx = s * jnp.arange(o)[None, :] + jnp.arange(3)[:, None] - 1
            return jax.nn.one_hot(idx, n, dtype=jnp.float32)        # (3, o, n)

        Sd = taps(OD, D)                                            # (3, OD, D)
        Ah = taps(OH, H)                                            # (3, OH, H)
        Aw = taps(OW, W)                                            # (3, OW, W)

        # Block-diag over batch, then stack the 3 taps along the row axis.
        S_cat = jnp.concatenate([jnp.kron(eye_n, Sd[k]) for k in range(3)],
                                axis=0)                             # (3*N*OD, N*D)

        # BatchNorm(eval) affine, scale folded into T's output columns.
        scale_c = p["gamma"] / jnp.sqrt(p["var"] + _EPS)
        shift_c = (p["b"] - p["mean"]) * scale_c + p["beta"]

        t_list = []
        for kd in range(3):
            wsl = p["w"][:, :, kd, :, :].astype(jnp.float32)        # (Cout, Cin, 3, 3)
            # T6[h, w, ci, oh, ow, co] = w[co, ci, kd, h-s*oh+1, w-s*ow+1] (0 if OOR)
            t6 = jnp.einsum("adh,bew,oiab->hwideo", Ah, Aw, wsl)
            t6 = t6 * scale_c                                       # fold BN scale (co axis)
            t_list.append(t6.reshape(H * W * cin, OH * OW * cout))
        T = jnp.stack(t_list, axis=0).astype(jnp.bfloat16)          # (3, HWCin, OHOWCout)

        shift_v = jnp.tile(shift_c, OH * OW).reshape(1, OH * OW * cout)
        shift_v = shift_v.astype(jnp.float32)

        packed += [S_cat, T, shift_v]
        D, H, W = OD, OH, OW
    return packed


# ----------------------------------------------------------------------------
# Full ConvNetwork forward
# ----------------------------------------------------------------------------
@jax.jit
def conv_network(x_ncdhw, packed):
    """x_ncdhw: (N, 1, D, H, W) f32 (PyTorch NCDHW) -> (N, 1, D', H', W')."""
    N, cin0, D, H, W = x_ncdhw.shape
    # Flatten to the kernel's (batch*depth, H*W*C) layout: batch folded into the
    # matmul M / sublane axis, (H, W, C) flattened onto the lane axis.
    x2d = jnp.transpose(x_ncdhw, (0, 2, 3, 4, 1)).reshape(N * D, H * W * cin0)

    # Output dims after the 4 blocks.
    d, h, w = D, H, W
    for (_, _, s) in _LAYER_CFG:
        d, h, w = _out_dim(d, s), _out_dim(h, s), _out_dim(w, s)
    cout_last = _LAYER_CFG[-1][1]
    lanes_out = h * w * cout_last

    # No grid: one kernel invocation, all operands are full-array VMEM blocks
    # (total resident footprint ~1 MB: bf16 folded weights + f32 activations).
    in_specs = [pl.BlockSpec(x2d.shape, functools.partial(_zero_idx, nd=2))]
    for arr in packed:
        in_specs.append(
            pl.BlockSpec(arr.shape, functools.partial(_zero_idx, nd=arr.ndim)))

    out = pl.pallas_call(
        _convnet_kernel,
        out_shape=jax.ShapeDtypeStruct((N * d, lanes_out), jnp.float32),
        in_specs=in_specs,
        out_specs=pl.BlockSpec((N * d, lanes_out),
                               functools.partial(_zero_idx, nd=2)),
        compiler_params=pltpu.CompilerParams(
            vmem_limit_bytes=16 * 1024 * 1024),   # generous headroom (~1 MB used)
    )(x2d, *packed)

    out = out.reshape(N, d, h, w, cout_last)
    return jnp.transpose(out, (0, 4, 1, 2, 3))                      # -> NCDHW


# ----------------------------------------------------------------------------
# Init + pure-JAX reference (lax conv, f32) for correctness checking.
# ----------------------------------------------------------------------------
def init_params(key):
    params = []
    for (cin, cout, _) in _LAYER_CFG:
        key, k_w, k_b, k_g, k_be, k_m, k_v = jax.random.split(key, 7)
        fan_in = cin * 27
        bound = 1.0 / jnp.sqrt(fan_in)
        params.append({
            "w": jax.random.uniform(k_w, (cout, cin, 3, 3, 3), jnp.float32,
                                    -bound, bound),
            "b": jax.random.uniform(k_b, (cout,), jnp.float32, -bound, bound),
            "gamma": 1.0 + 0.1 * jax.random.normal(k_g, (cout,), jnp.float32),
            "beta": 0.1 * jax.random.normal(k_be, (cout,), jnp.float32),
            "mean": 0.1 * jax.random.normal(k_m, (cout,), jnp.float32),
            "var": jnp.abs(1.0 + 0.1 * jax.random.normal(k_v, (cout,),
                                                         jnp.float32)),
        })
    return params


def _reference(x_ncdhw, params, eps=_EPS):
    x = jnp.transpose(x_ncdhw, (0, 2, 3, 4, 1))
    for p, (_, _, s) in zip(params, _LAYER_CFG):
        w_dhwio = jnp.transpose(p["w"], (2, 3, 4, 1, 0))
        y = lax.conv_general_dilated(
            x, w_dhwio, window_strides=(s, s, s),
            padding=((1, 1), (1, 1), (1, 1)),
            dimension_numbers=("NDHWC", "DHWIO", "NDHWC"))
        y = y + p["b"]
        y = (y - p["mean"]) / jnp.sqrt(p["var"] + eps) * p["gamma"] + p["beta"]
        x = jnp.maximum(y, 0.0)
    return jnp.transpose(x, (0, 4, 1, 2, 3))


if __name__ == "__main__":
    key = jax.random.PRNGKey(0)
    k_params, k_x = jax.random.split(key)
    params = init_params(k_params)

    # Small NCDHW input consistent with Conv3d(in_channels=1, ...).
    N = 2
    x = jax.random.normal(k_x, (N, 1, 16, 16, 16), jnp.float32)

    packed = prepare_kernel_params(params, batch=N, in_spatial=(16, 16, 16))

    out = conv_network(x, packed)
    out = jax.block_until_ready(out)

    ref = _reference(x, params)
    assert out.shape == ref.shape == (2, 1, 4, 4, 4), out.shape
    # Tolerance loosened vs. the f32 version: folded weights / matmul operands in
    # bf16 (accumulation in f32) introduce ~1e-2 absolute error on O(1) outputs.
    assert jnp.allclose(out, ref, rtol=5e-2, atol=5e-2), "mismatch vs reference"

    print("KERNEL_OK")
</pallas_src>

<mosaic_0001>
module attributes {stable_mosaic.version = 11 : i64} {
  func.func @_convnet_kernel(%arg0: memref<32x256xf32, #tpu.memory_space<vmem>>, %arg1: memref<48x32xf32, #tpu.memory_space<vmem>>, %arg2: memref<3x256x256xbf16, #tpu.memory_space<vmem>>, %arg3: memref<1x256xf32, #tpu.memory_space<vmem>>, %arg4: memref<24x16xf32, #tpu.memory_space<vmem>>, %arg5: memref<3x256x128xbf16, #tpu.memory_space<vmem>>, %arg6: memref<1x128xf32, #tpu.memory_space<vmem>>, %arg7: memref<24x8xf32, #tpu.memory_space<vmem>>, %arg8: memref<3x128x256xbf16, #tpu.memory_space<vmem>>, %arg9: memref<1x256xf32, #tpu.memory_space<vmem>>, %arg10: memref<24x8xf32, #tpu.memory_space<vmem>>, %arg11: memref<3x256x16xbf16, #tpu.memory_space<vmem>>, %arg12: memref<1x16xf32, #tpu.memory_space<vmem>>, %arg13: memref<8x16xf32, #tpu.memory_space<vmem>>) attributes {dimension_semantics = [], scalar_prefetch = 0 : i64, scratch_operands = 0 : i64, tpu.core_type = #tpu.core_type<tc>} {
    %c0 = arith.constant 0 : index
    %c0_0 = arith.constant 0 : index
    %0 = vector.load %arg0[%c0, %c0_0] : memref<32x256xf32, #tpu.memory_space<vmem>>, vector<32x256xf32>
    %c0_1 = arith.constant 0 : index
    %c0_2 = arith.constant 0 : index
    %1 = vector.load %arg1[%c0_1, %c0_2] : memref<48x32xf32, #tpu.memory_space<vmem>>, vector<48x32xf32>
    %cst = arith.constant dense<0.000000e+00> : vector<48x256xf32>
    %2 = tpu.matmul %1, %0, %cst {dimension_numbers = #tpu.dot_dimension_numbers<[1], [0], [0], [1], [0, 0, 1, 1], [], []>} : vector<48x32xf32>, vector<32x256xf32>, vector<48x256xf32> -> vector<48x256xf32>
    %3 = vector.extract_strided_slice %2 {offsets = [0, 0], sizes = [16, 256], strides = [1, 1]} : vector<48x256xf32> to vector<16x256xf32>
    %4 = arith.truncf %3 : vector<16x256xf32> to vector<16x256xbf16>
    %c0_3 = arith.constant 0 : index
    %c0_4 = arith.constant 0 : index
    %c0_5 = arith.constant 0 : index
    %5 = vector.load %arg2[%c0_3, %c0_4, %c0_5] : memref<3x256x256xbf16, #tpu.memory_space<vmem>>, vector<1x256x256xbf16>
    %6 = vector.shape_cast %5 : vector<1x256x256xbf16> to vector<256x256xbf16>
    %cst_6 = arith.constant dense<0.000000e+00> : vector<16x256xf32>
    %7 = tpu.matmul %4, %6, %cst_6 {dimension_numbers = #tpu.dot_dimension_numbers<[1], [0], [0], [1], [0, 0, 1, 1], [], []>} : vector<16x256xbf16>, vector<256x256xbf16>, vector<16x256xf32> -> vector<16x256xf32>
    %8 = vector.extract_strided_slice %2 {offsets = [16, 0], sizes = [16, 256], strides = [1, 1]} : vector<48x256xf32> to vector<16x256xf32>
    %9 = arith.truncf %8 : vector<16x256xf32> to vector<16x256xbf16>
    %c1 = arith.constant 1 : index
    %c0_7 = arith.constant 0 : index
    %c0_8 = arith.constant 0 : index
    %10 = vector.load %arg2[%c1, %c0_7, %c0_8] : memref<3x256x256xbf16, #tpu.memory_space<vmem>>, vector<1x256x256xbf16>
    %11 = vector.shape_cast %10 : vector<1x256x256xbf16> to vector<256x256xbf16>
    %cst_9 = arith.constant dense<0.000000e+00> : vector<16x256xf32>
    %12 = tpu.matmul %9, %11, %cst_9 {dimension_numbers = #tpu.dot_dimension_numbers<[1], [0], [0], [1], [0, 0, 1, 1], [], []>} : vector<16x256xbf16>, vector<256x256xbf16>, vector<16x256xf32> -> vector<16x256xf32>
    %13 = arith.addf %7, %12 : vector<16x256xf32>
    %14 = vector.extract_strided_slice %2 {offsets = [32, 0], sizes = [16, 256], strides = [1, 1]} : vector<48x256xf32> to vector<16x256xf32>
    %15 = arith.truncf %14 : vector<16x256xf32> to vector<16x256xbf16>
    %c2 = arith.constant 2 : index
    %c0_10 = arith.constant 0 : index
    %c0_11 = arith.constant 0 : index
    %16 = vector.load %arg2[%c2, %c0_10, %c0_11] : memref<3x256x256xbf16, #tpu.memory_space<vmem>>, vector<1x256x256xbf16>
    %17 = vector.shape_cast %16 : vector<1x256x256xbf16> to vector<256x256xbf16>
    %cst_12 = arith.constant dense<0.000000e+00> : vector<16x256xf32>
    %18 = tpu.matmul %15, %17, %cst_12 {dimension_numbers = #tpu.dot_dimension_numbers<[1], [0], [0], [1], [0, 0, 1, 1], [], []>} : vector<16x256xbf16>, vector<256x256xbf16>, vector<16x256xf32> -> vector<16x256xf32>
    %19 = arith.addf %13, %18 : vector<16x256xf32>
    %c0_13 = arith.constant 0 : index
    %c0_14 = arith.constant 0 : index
    %20 = vector.load %arg3[%c0_13, %c0_14] : memref<1x256xf32, #tpu.memory_space<vmem>>, vector<1x256xf32>
    %21 = vector.broadcast %20 : vector<1x256xf32> to vector<16x256xf32>
    %22 = arith.addf %19, %21 : vector<16x256xf32>
    %cst_15 = arith.constant 0.000000e+00 : f32
    %23 = vector.broadcast %cst_15 : f32 to vector<16x256xf32>
    %24 = arith.maximumf %22, %23 : vector<16x256xf32>
    %c0_16 = arith.constant 0 : index
    %c0_17 = arith.constant 0 : index
    %25 = vector.load %arg4[%c0_16, %c0_17] : memref<24x16xf32, #tpu.memory_space<vmem>>, vector<24x16xf32>
    %cst_18 = arith.constant dense<0.000000e+00> : vector<24x256xf32>
    %26 = tpu.matmul %25, %24, %cst_18 {dimension_numbers = #tpu.dot_dimension_numbers<[1], [0], [0], [1], [0, 0, 1, 1], [], []>} : vector<24x16xf32>, vector<16x256xf32>, vector<24x256xf32> -> vector<24x256xf32>
    %27 = vector.extract_strided_slice %26 {offsets = [0, 0], sizes = [8, 256], strides = [1, 1]} : vector<24x256xf32> to vector<8x256xf32>
    %28 = arith.truncf %27 : vector<8x256xf32> to vector<8x256xbf16>
    %c0_19 = arith.constant 0 : index
    %c0_20 = arith.constant 0 : index
    %c0_21 = arith.constant 0 : index
    %29 = vector.load %arg5[%c0_19, %c0_20, %c0_21] : memref<3x256x128xbf16, #tpu.memory_space<vmem>>, vector<1x256x128xbf16>
    %30 = vector.shape_cast %29 : vector<1x256x128xbf16> to vector<256x128xbf16>
    %cst_22 = arith.constant dense<0.000000e+00> : vector<8x128xf32>
    %31 = tpu.matmul %28, %30, %cst_22 {dimension_numbers = #tpu.dot_dimension_numbers<[1], [0], [0], [1], [0, 0, 1, 1], [], []>} : vector<8x256xbf16>, vector<256x128xbf16>, vector<8x128xf32> -> vector<8x128xf32>
    %32 = vector.extract_strided_slice %26 {offsets = [8, 0], sizes = [8, 256], strides = [1, 1]} : vector<24x256xf32> to vector<8x256xf32>
    %33 = arith.truncf %32 : vector<8x256xf32> to vector<8x256xbf16>
    %c1_23 = arith.constant 1 : index
    %c0_24 = arith.constant 0 : index
    %c0_25 = arith.constant 0 : index
    %34 = vector.load %arg5[%c1_23, %c0_24, %c0_25] : memref<3x256x128xbf16, #tpu.memory_space<vmem>>, vector<1x256x128xbf16>
    %35 = vector.shape_cast %34 : vector<1x256x128xbf16> to vector<256x128xbf16>
    %cst_26 = arith.constant dense<0.000000e+00> : vector<8x128xf32>
    %36 = tpu.matmul %33, %35, %cst_26 {dimension_numbers = #tpu.dot_dimension_numbers<[1], [0], [0], [1], [0, 0, 1, 1], [], []>} : vector<8x256xbf16>, vector<256x128xbf16>, vector<8x128xf32> -> vector<8x128xf32>
    %37 = arith.addf %31, %36 : vector<8x128xf32>
    %38 = vector.extract_strided_slice %26 {offsets = [16, 0], sizes = [8, 256], strides = [1, 1]} : vector<24x256xf32> to vector<8x256xf32>
    %39 = arith.truncf %38 : vector<8x256xf32> to vector<8x256xbf16>
    %c2_27 = arith.constant 2 : index
    %c0_28 = arith.constant 0 : index
    %c0_29 = arith.constant 0 : index
    %40 = vector.load %arg5[%c2_27, %c0_28, %c0_29] : memref<3x256x128xbf16, #tpu.memory_space<vmem>>, vector<1x256x128xbf16>
    %41 = vector.shape_cast %40 : vector<1x256x128xbf16> to vector<256x128xbf16>
    %cst_30 = arith.constant dense<0.000000e+00> : vector<8x128xf32>
    %42 = tpu.matmul %39, %41, %cst_30 {dimension_numbers = #tpu.dot_dimension_numbers<[1], [0], [0], [1], [0, 0, 1, 1], [], []>} : vector<8x256xbf16>, vector<256x128xbf16>, vector<8x128xf32> -> vector<8x128xf32>
    %43 = arith.addf %37, %42 : vector<8x128xf32>
    %c0_31 = arith.constant 0 : index
    %c0_32 = arith.constant 0 : index
    %44 = vector.load %arg6[%c0_31, %c0_32] : memref<1x128xf32, #tpu.memory_space<vmem>>, vector<1x128xf32>
    %45 = vector.broadcast %44 : vector<1x128xf32> to vector<8x128xf32>
    %46 = arith.addf %43, %45 : vector<8x128xf32>
    %cst_33 = arith.constant 0.000000e+00 : f32
    %47 = vector.broadcast %cst_33 : f32 to vector<8x128xf32>
    %48 = arith.maximumf %46, %47 : vector<8x128xf32>
    %c0_34 = arith.constant 0 : index
    %c0_35 = arith.constant 0 : index
    %49 = vector.load %arg7[%c0_34, %c0_35] : memref<24x8xf32, #tpu.memory_space<vmem>>, vector<24x8xf32>
    %cst_36 = arith.constant dense<0.000000e+00> : vector<24x128xf32>
    %50 = tpu.matmul %49, %48, %cst_36 {dimension_numbers = #tpu.dot_dimension_numbers<[1], [0], [0], [1], [0, 0, 1, 1], [], []>} : vector<24x8xf32>, vector<8x128xf32>, vector<24x128xf32> -> vector<24x128xf32>
    %51 = vector.extract_strided_slice %50 {offsets = [0, 0], sizes = [8, 128], strides = [1, 1]} : vector<24x128xf32> to vector<8x128xf32>
    %52 = arith.truncf %51 : vector<8x128xf32> to vector<8x128xbf16>
    %c0_37 = arith.constant 0 : index
    %c0_38 = arith.constant 0 : index
    %c0_39 = arith.constant 0 : index
    %53 = vector.load %arg8[%c0_37, %c0_38, %c0_39] : memref<3x128x256xbf16, #tpu.memory_space<vmem>>, vector<1x128x256xbf16>
    %54 = vector.shape_cast %53 : vector<1x128x256xbf16> to vector<128x256xbf16>
    %cst_40 = arith.constant dense<0.000000e+00> : vector<8x256xf32>
    %55 = tpu.matmul %52, %54, %cst_40 {dimension_numbers = #tpu.dot_dimension_numbers<[1], [0], [0], [1], [0, 0, 1, 1], [], []>} : vector<8x128xbf16>, vector<128x256xbf16>, vector<8x256xf32> -> vector<8x256xf32>
    %56 = vector.extract_strided_slice %50 {offsets = [8, 0], sizes = [8, 128], strides = [1, 1]} : vector<24x128xf32> to vector<8x128xf32>
    %57 = arith.truncf %56 : vector<8x128xf32> to vector<8x128xbf16>
    %c1_41 = arith.constant 1 : index
    %c0_42 = arith.constant 0 : index
    %c0_43 = arith.constant 0 : index
    %58 = vector.load %arg8[%c1_41, %c0_42, %c0_43] : memref<3x128x256xbf16, #tpu.memory_space<vmem>>, vector<1x128x256xbf16>
    %59 = vector.shape_cast %58 : vector<1x128x256xbf16> to vector<128x256xbf16>
    %cst_44 = arith.constant dense<0.000000e+00> : vector<8x256xf32>
    %60 = tpu.matmul %57, %59, %cst_44 {dimension_numbers = #tpu.dot_dimension_numbers<[1], [0], [0], [1], [0, 0, 1, 1], [], []>} : vector<8x128xbf16>, vector<128x256xbf16>, vector<8x256xf32> -> vector<8x256xf32>
    %61 = arith.addf %55, %60 : vector<8x256xf32>
    %62 = vector.extract_strided_slice %50 {offsets = [16, 0], sizes = [8, 128], strides = [1, 1]} : vector<24x128xf32> to vector<8x128xf32>
    %63 = arith.truncf %62 : vector<8x128xf32> to vector<8x128xbf16>
    %c2_45 = arith.constant 2 : index
    %c0_46 = arith.constant 0 : index
    %c0_47 = arith.constant 0 : index
    %64 = vector.load %arg8[%c2_45, %c0_46, %c0_47] : memref<3x128x256xbf16, #tpu.memory_space<vmem>>, vector<1x128x256xbf16>
    %65 = vector.shape_cast %64 : vector<1x128x256xbf16> to vector<128x256xbf16>
    %cst_48 = arith.constant dense<0.000000e+00> : vector<8x256xf32>
    %66 = tpu.matmul %63, %65, %cst_48 {dimension_numbers = #tpu.dot_dimension_numbers<[1], [0], [0], [1], [0, 0, 1, 1], [], []>} : vector<8x128xbf16>, vector<128x256xbf16>, vector<8x256xf32> -> vector<8x256xf32>
    %67 = arith.addf %61, %66 : vector<8x256xf32>
    %c0_49 = arith.constant 0 : index
    %c0_50 = arith.constant 0 : index
    %68 = vector.load %arg9[%c0_49, %c0_50] : memref<1x256xf32, #tpu.memory_space<vmem>>, vector<1x256xf32>
    %69 = vector.broadcast %68 : vector<1x256xf32> to vector<8x256xf32>
    %70 = arith.addf %67, %69 : vector<8x256xf32>
    %cst_51 = arith.constant 0.000000e+00 : f32
    %71 = vector.broadcast %cst_51 : f32 to vector<8x256xf32>
    %72 = arith.maximumf %70, %71 : vector<8x256xf32>
    %c0_52 = arith.constant 0 : index
    %c0_53 = arith.constant 0 : index
    %73 = vector.load %arg10[%c0_52, %c0_53] : memref<24x8xf32, #tpu.memory_space<vmem>>, vector<24x8xf32>
    %cst_54 = arith.constant dense<0.000000e+00> : vector<24x256xf32>
    %74 = tpu.matmul %73, %72, %cst_54 {dimension_numbers = #tpu.dot_dimension_numbers<[1], [0], [0], [1], [0, 0, 1, 1], [], []>} : vector<24x8xf32>, vector<8x256xf32>, vector<24x256xf32> -> vector<24x256xf32>
    %75 = vector.extract_strided_slice %74 {offsets = [0, 0], sizes = [8, 256], strides = [1, 1]} : vector<24x256xf32> to vector<8x256xf32>
    %76 = arith.truncf %75 : vector<8x256xf32> to vector<8x256xbf16>
    %c0_55 = arith.constant 0 : index
    %c0_56 = arith.constant 0 : index
    %c0_57 = arith.constant 0 : index
    %77 = vector.load %arg11[%c0_55, %c0_56, %c0_57] : memref<3x256x16xbf16, #tpu.memory_space<vmem>>, vector<1x256x16xbf16>
    %78 = vector.shape_cast %77 : vector<1x256x16xbf16> to vector<256x16xbf16>
    %cst_58 = arith.constant dense<0.000000e+00> : vector<8x16xf32>
    %79 = tpu.matmul %76, %78, %cst_58 {dimension_numbers = #tpu.dot_dimension_numbers<[1], [0], [0], [1], [0, 0, 1, 1], [], []>} : vector<8x256xbf16>, vector<256x16xbf16>, vector<8x16xf32> -> vector<8x16xf32>
    %80 = vector.extract_strided_slice %74 {offsets = [8, 0], sizes = [8, 256], strides = [1, 1]} : vector<24x256xf32> to vector<8x256xf32>
    %81 = arith.truncf %80 : vector<8x256xf32> to vector<8x256xbf16>
    %c1_59 = arith.constant 1 : index
    %c0_60 = arith.constant 0 : index
    %c0_61 = arith.constant 0 : index
    %82 = vector.load %arg11[%c1_59, %c0_60, %c0_61] : memref<3x256x16xbf16, #tpu.memory_space<vmem>>, vector<1x256x16xbf16>
    %83 = vector.shape_cast %82 : vector<1x256x16xbf16> to vector<256x16xbf16>
    %cst_62 = arith.constant dense<0.000000e+00> : vector<8x16xf32>
    %84 = tpu.matmul %81, %83, %cst_62 {dimension_numbers = #tpu.dot_dimension_numbers<[1], [0], [0], [1], [0, 0, 1, 1], [], []>} : vector<8x256xbf16>, vector<256x16xbf16>, vector<8x16xf32> -> vector<8x16xf32>
    %85 = arith.addf %79, %84 : vector<8x16xf32>
    %86 = vector.extract_strided_slice %74 {offsets = [16, 0], sizes = [8, 256], strides = [1, 1]} : vector<24x256xf32> to vector<8x256xf32>
    %87 = arith.truncf %86 : vector<8x256xf32> to vector<8x256xbf16>
    %c2_63 = arith.constant 2 : index
    %c0_64 = arith.constant 0 : index
    %c0_65 = arith.constant 0 : index
    %88 = vector.load %arg11[%c2_63, %c0_64, %c0_65] : memref<3x256x16xbf16, #tpu.memory_space<vmem>>, vector<1x256x16xbf16>
    %89 = vector.shape_cast %88 : vector<1x256x16xbf16> to vector<256x16xbf16>
    %cst_66 = arith.constant dense<0.000000e+00> : vector<8x16xf32>
    %90 = tpu.matmul %87, %89, %cst_66 {dimension_numbers = #tpu.dot_dimension_numbers<[1], [0], [0], [1], [0, 0, 1, 1], [], []>} : vector<8x256xbf16>, vector<256x16xbf16>, vector<8x16xf32> -> vector<8x16xf32>
    %91 = arith.addf %85, %90 : vector<8x16xf32>
    %c0_67 = arith.constant 0 : index
    %c0_68 = arith.constant 0 : index
    %92 = vector.load %arg12[%c0_67, %c0_68] : memref<1x16xf32, #tpu.memory_space<vmem>>, vector<1x16xf32>
    %93 = vector.broadcast %92 : vector<1x16xf32> to vector<8x16xf32>
    %94 = arith.addf %91, %93 : vector<8x16xf32>
    %cst_69 = arith.constant 0.000000e+00 : f32
    %95 = vector.broadcast %cst_69 : f32 to vector<8x16xf32>
    %96 = arith.maximumf %94, %95 : vector<8x16xf32>
    %c0_70 = arith.constant 0 : index
    %c0_71 = arith.constant 0 : index
    %97 = vector.load %arg13[%c0_70, %c0_71] : memref<8x16xf32, #tpu.memory_space<vmem>>, vector<8x16xf32>
    tpu.vector_store %arg13[%c0_70, %c0_71], %96 {strides = array<i32>} : memref<8x16xf32, #tpu.memory_space<vmem>>, vector<8x16xf32>,
    return
  }
}

</mosaic_0001>

<bundles_post_ra>
// kernel: conv_network.1
= control target key start
LH: loop header
LB: loop body
LE: loop exit
PB: predicated region body
PF: predicated region fallthrough
CT: control target
= control target key end

     0   :  { %18 = vsyncpa [#allocation3], 0  ;;  %s4534_s0 = inlined_call_operand.vmem [shape: f32[32,256], index: 0, kind: input, shape index: {}]   ;;  %s4535_s1 = inlined_call_operand.vmem [shape: f32[48,32], index: 1, kind: input, shape index: {}]   ;;  %s4536_s2 = inlined_call_operand.vmem [shape: bf16[3,256,256], index: 2, kind: input, shape index: {}]   ;;  %s4537_s3 = inlined_call_operand.vmem [shape: f32[1,256], index: 3, kind: input, shape index: {}]   ;;  %s4538_s4 = inlined_call_operand.vmem [shape: f32[24,16], index: 4, kind: input, shape index: {}]   ;;  %s4539_s5 = inlined_call_operand.vmem [shape: bf16[3,256,128], index: 5, kind: input, shape index: {}]   ;;  %s4540_s6 = inlined_call_operand.hbm [shape: f32[1,128], index: 6, kind: input, shape index: {}]   ;;  %s4541_s7 = inlined_call_operand.vmem [shape: f32[24,8], index: 7, kind: input, shape index: {}]   ;;  %s4542_s8 = inlined_call_operand.hbm [shape: bf16[3,128,256], index: 8, kind: input, shape index: {}]   ;;  %s4543_s9 = inlined_call_operand.vmem [shape: f32[1,256], index: 9, kind: input, shape index: {}]   ;;  %s4544_s10 = inlined_call_operand.vmem [shape: f32[24,8], index: 10, kind: input, shape index: {}]   ;;  %s4545_s11 = inlined_call_operand.vmem [shape: bf16[3,256,16], index: 11, kind: input, shape index: {}]   ;;  %s4546_s12 = inlined_call_operand.vmem [shape: f32[1,16], index: 12, kind: input, shape index: {}]   ;;  %s4547_s13 = inlined_call_operand.vmem [shape: f32[8,16], index: 13, kind: output, shape index: {}]  }
   0x1   :  { %19 = vsyncpa [#allocation5], 0  ;;  %s3694_s25 = smov [#allocation2]   ;;  %s3695_s27 = smov [#allocation4]  }
   0x2   :  { %s38_s26 = sshll.u32 %s3694_s25, 4  ;;  %s49_s28 = sshll.u32 %s3695_s27, 4  ;;  %s39_s26 = int_to_ptr.vmem [resolvable:$true] %s38_s26  ;;  %s3771_s28 = int_to_ptr.vmem [resolvable:$true] %s49_s28 }
   0x3   :  { %s3646_s14 = scalar_lea.hbm %s4540_s6, 16 }
   0x4   :  { %p3647_p0 = scmp.ne.s32.totalorder %s4540_s6, %s3646_s14  ;;  %p3650_p1 = scmp.lt.u32.totalorder %s3646_s14, %s4540_s6 }
   0x6   :  { %p3652_p2 = pnand %p3650_p1, %p3647_p0 }
   0x8   :  { %3655 = shalt.err (!%p3652_p2)
}
   0x9   :  { %s3656_s19 = scalar_lea.vmem %s39_s26, 16  ;;  %s3660_s20 = scalar_lea.vmem %s39_s26, 32 }
   0xa   :  { %p3657_p3 = scmp.ne.s32.totalorder %s39_s26, %s3656_s19  ;;  %p3661_p4 = scmp.lt.s32.totalorder %s39_s26, %s39_s26 }
   0xb   :  { %p3662_p5 = scmp.lt.s32.totalorder %s3660_s20, %s3656_s19 }
   0xd   :  { %p3663_p6 = por %p3662_p5, %p3661_p4 }
   0xf   :  { %p3664_p7 = pnand %p3663_p6, %p3657_p3 }
  0x11   :  { %3667 = shalt.err (!%p3664_p7)
}
  0x12   :  { %41 = dma.hbm_to_vmem [thread:$0]  %s4540_s6, 16, %s39_s26, [#allocation3]  }
  0x13   :  { %s3668_s25 = scalar_lea.hbm %s4542_s8, 6144 }
  0x14   :  { %p3669_p8 = scmp.ne.s32.totalorder %s4542_s8, %s3668_s25  ;;  %p3672_p9 = scmp.lt.u32.totalorder %s3668_s25, %s4542_s8 }
  0x16   :  { %p3674_p10 = pnand %p3672_p9, %p3669_p8 }
  0x18   :  { %3677 = shalt.err (!%p3674_p10)
}
  0x19   :  { %s3678_s15 = scalar_lea.vmem %s3771_s28, 6144  ;;  %p3683_p12 = scmp.lt.s32.totalorder %s3771_s28, %s3771_s28 }
  0x1a   :  { %p3679_p11 = scmp.ne.s32.totalorder %s3771_s28, %s3678_s15  ;;  %p3684_p13 = scmp.lt.s32.totalorder %s3678_s15, %s3678_s15 }
  0x1c   :  { %p3685_p0 = por %p3684_p13, %p3683_p12 }
  0x1e   :  { %p3686_p1 = pnand %p3685_p0, %p3679_p11 }
  0x20   :  { %3689 = shalt.err (!%p3686_p1)
}
  0x21   :  { %s3696_s6 = smov 128   ;;  %s3697_s26 = smov 8  }
  0x22   :  { %55 = dma.hbm_to_vmem [thread:$0]  %s4542_s8, 6144, %s3771_s28, [#allocation5], %s3696_s6, %s3696_s6, %s3697_s26  }
  0x23   :  { %3690 = dma.done.wait [#allocation3], 16  }
  0x24   :  { %3691 = vsyncadd [#allocation3], 4294967280 }
  0x25   :  { %3692 = dma.done.wait [#allocation5], 6144  }
  0x26   :  { %3693 = vsyncadd [#allocation5], 4294961152  ;;  %v3698_v0 = vmov 0.0   ;;  %v72_v1 = vld [vmem:[%s4534_s0 + $0x8] sm:$0xff]  ;;  %v74_v2 = vld [vmem:[%s4534_s0 + $0x18] sm:$0xff]  ;;  %vm85_vm0 = vcmask 261120  }
  0x27   :  { %168 = vmatprep.mubr.f32.mxu1 %v3698_v0  ;;  %1019 = vmatprep.mubr.f32.mxu0 %v3698_v0  ;;  %v71_v3 = vld [vmem:[%s4534_s0] sm:$0xff]  ;;  %v3307_v4 = vpack.c.bf16 %v74_v2, %v72_v1  ;;  %v73_v5 = vld [vmem:[%s4534_s0 + $0x10] sm:$0xff]  ;;  %v76_v6 = vld [vmem:[%s4534_s0 + $0x28] sm:$0xff]  ;;  %vm945_vm1 = vcmask 130048   ;;  %vm3699_vm2 = vmmov 0   ;;  %vm1563_vm3 = vcmask 64512  }
  0x28   :  { %v78_v7 = vld [vmem:[%s4534_s0 + $0x38] sm:$0xff]  ;;  %v3309_v8 = vpack.c.bf16 %v73_v5, %v71_v3  ;;  %v75_v10 = vld [vmem:[%s4534_s0 + $0x20] sm:$0xff]  ;;  %v77_v11 = vld [vmem:[%s4534_s0 + $0x30] sm:$0xff] }
  0x29   :  { %v3311_v9 = vpack.c.bf16 %v78_v7, %v76_v6  ;;  %3308 = vmatprep.subr.bf16.mxu1 %v3307_v4  ;;  %v3313_v12 = vpack.c.bf16 %v77_v11, %v75_v10  ;;  %v3336_v13 = vld [vmem:[%s4536_s2 + $0x104] ss:$8 sps:$4 sm:$0xff]   ;;  %v3334_v15 = vld [vmem:[%s4536_s2 + $0x100] ss:$8 sps:$4 sm:$0xff]   ;;  %v3339_v16 = vld [vmem:[%s4536_s2 + $0x114] ss:$8 sps:$4 sm:$0xff]  }
  0x2a   :  { %3310 = vmatpush1.bf16.msra.mxu1 %v3309_v8  ;;  %v79_v14 = vld [vmem:[%s4535_s1] sm:$0xff]  ;;  %v80_v17 = vld [vmem:[%s4535_s1 + $0x8] sm:$0xff]  ;;  %v3337_v18 = vld [vmem:[%s4536_s2 + $0x110] ss:$8 sps:$4 sm:$0xff]  }
  0x2b   :  { %3312 = vmatprep.subr.bf16.mxu1 %v3311_v9  ;;  %v3342_v19 = vld [vmem:[%s4536_s2 + $0x124] ss:$8 sps:$4 sm:$0xff]   ;;  %v81_v20 = vld [vmem:[%s4535_s1 + $0x10] sm:$0xff]  ;;  %v3340_v21 = vld [vmem:[%s4536_s2 + $0x120] ss:$8 sps:$4 sm:$0xff]  }
  0x2c   :  { %v3345_v22 = vld [vmem:[%s4536_s2 + $0x134] ss:$8 sps:$4 sm:$0xff]   ;;  %v3343_v24 = vld [vmem:[%s4536_s2 + $0x130] ss:$8 sps:$4 sm:$0xff]   ;;  %v3348_v25 = vld [vmem:[%s4536_s2 + $0x144] ss:$8 sps:$4 sm:$0xff]  }
  0x2d   :  { %v82_v23 = vld [vmem:[%s4535_s1 + $0x18] sm:$0xff]  ;;  %v83_v26 = vld [vmem:[%s4535_s1 + $0x20] sm:$0xff]  ;;  %v84_v29 = vld [vmem:[%s4535_s1 + $0x28] sm:$0xff] }
  0x2e   :  { %3314 = vmatpush1.bf16.msra.mxu1 %v3313_v12  ;;  %v3346_v27 = vld [vmem:[%s4536_s2 + $0x140] ss:$8 sps:$4 sm:$0xff]   ;;  %v3351_v28 = vld [vmem:[%s4536_s2 + $0x154] ss:$8 sps:$4 sm:$0xff]   ;;  %v3349_v30 = vld [vmem:[%s4536_s2 + $0x150] ss:$8 sps:$4 sm:$0xff]  }
  0x2f   :  { %434 = vmatprep.subr.bf16.mxu1 %v3336_v13  ;;  %v3354_v31 = vld [vmem:[%s4536_s2 + $0x164] ss:$8 sps:$4 sm:$0xff]   ;;  %v3352_v32 = vld [vmem:[%s4536_s2 + $0x160] ss:$8 sps:$4 sm:$0xff]   ;;  %v3357_v33 = vld [vmem:[%s4536_s2 + $0x174] ss:$8 sps:$4 sm:$0xff]  }
  0x30   :  { %v3355_v34 = vld [vmem:[%s4536_s2 + $0x170] ss:$8 sps:$4 sm:$0xff]   ;;  %v3360_v35 = vld [vmem:[%s4536_s2 + $0x184] ss:$8 sps:$4 sm:$0xff]   ;;  %v3358_v36 = vld [vmem:[%s4536_s2 + $0x180] ss:$8 sps:$4 sm:$0xff]  }
  0x31   :  { %2711 = vmatmul.mubr.msk.f32.vlgmr.msra.gmra.mrb[0].mxu1 %vm85_vm0, %v79_v14  ;;  %v3363_v37 = vld [vmem:[%s4536_s2 + $0x194] ss:$8 sps:$4 sm:$0xff]   ;;  %v3361_v38 = vld [vmem:[%s4536_s2 + $0x190] ss:$8 sps:$4 sm:$0xff]   ;;  %v3366_v39 = vld [vmem:[%s4536_s2 + $0x1a4] ss:$8 sps:$4 sm:$0xff]  }
  0x32   :  { %174 = vmatprep.mubr.f32.mxu1 %v3698_v0  ;;  %435 = vmatpush1.bf16.msra.mxu1 %v3334_v15  ;;  %v3364_v40 = vld [vmem:[%s4536_s2 + $0x1a0] ss:$8 sps:$4 sm:$0xff]   ;;  %v3369_v41 = vld [vmem:[%s4536_s2 + $0x1b4] ss:$8 sps:$4 sm:$0xff]   ;;  %v3367_v42 = vld [vmem:[%s4536_s2 + $0x1b0] ss:$8 sps:$4 sm:$0xff]  }
  0x33   :  { %436 = vmatprep.subr.bf16.mxu1 %v3339_v16  ;;  %v3372_v43 = vld [vmem:[%s4536_s2 + $0x1c4] ss:$8 sps:$4 sm:$0xff]   ;;  %v3370_v44 = vld [vmem:[%s4536_s2 + $0x1c0] ss:$8 sps:$4 sm:$0xff]   ;;  %v3375_v45 = vld [vmem:[%s4536_s2 + $0x1d4] ss:$8 sps:$4 sm:$0xff]  }
  0x34   :  { %v3373_v46 = vld [vmem:[%s4536_s2 + $0x1d0] ss:$8 sps:$4 sm:$0xff]   ;;  %v3378_v47 = vld [vmem:[%s4536_s2 + $0x1e4] ss:$8 sps:$4 sm:$0xff]   ;;  %v3376_v48 = vld [vmem:[%s4536_s2 + $0x1e0] ss:$8 sps:$4 sm:$0xff]  }
  0x35   :  { %2712 = vmatmul.mubr.msk.f32.gmra.mrb[2].mxu1 %vm85_vm0, %v80_v17  ;;  %v3381_v49 = vld [vmem:[%s4536_s2 + $0x1f4] ss:$8 sps:$4 sm:$0xff]   ;;  %v3379_v50 = vld [vmem:[%s4536_s2 + $0x1f0] ss:$8 sps:$4 sm:$0xff]   ;;  %v3384_v51 = vld [vmem:[%s4536_s2 + $0x4] ss:$8 sps:$4 sm:$0xff]  }
  0x36   :  { %180 = vmatprep.mubr.f32.mxu1 %v3698_v0  ;;  %437 = vmatpush1.bf16.msra.mxu1 %v3337_v18  ;;  %v3382_v1 = vld [vmem:[%s4536_s2] ss:$8 sps:$4 sm:$0xff]   ;;  %v3387_v2 = vld [vmem:[%s4536_s2 + $0x14] ss:$8 sps:$4 sm:$0xff]   ;;  %v3385_v5 = vld [vmem:[%s4536_s2 + $0x10] ss:$8 sps:$4 sm:$0xff]  }
  0x37   :  { %438 = vmatprep.subr.bf16.mxu1 %v3342_v19  ;;  %v3390_v6 = vld [vmem:[%s4536_s2 + $0x24] ss:$8 sps:$4 sm:$0xff]   ;;  %v3388_v10 = vld [vmem:[%s4536_s2 + $0x20] ss:$8 sps:$4 sm:$0xff]   ;;  %v3393_v12 = vld [vmem:[%s4536_s2 + $0x34] ss:$8 sps:$4 sm:$0xff]  }
  0x38   :  { %v3391_v13 = vld [vmem:[%s4536_s2 + $0x30] ss:$8 sps:$4 sm:$0xff]   ;;  %v3396_v14 = vld [vmem:[%s4536_s2 + $0x44] ss:$8 sps:$4 sm:$0xff]   ;;  %v3394_v15 = vld [vmem:[%s4536_s2 + $0x40] ss:$8 sps:$4 sm:$0xff]  }
  0x39   :  { %2713 = vmatmul.mubr.msk.f32.gmra.mrb[4].mxu1 %vm85_vm0, %v81_v20  ;;  %v3399_v16 = vld [vmem:[%s4536_s2 + $0x54] ss:$8 sps:$4 sm:$0xff]   ;;  %v3397_v17 = vld [vmem:[%s4536_s2 + $0x50] ss:$8 sps:$4 sm:$0xff]   ;;  %v3402_v18 = vld [vmem:[%s4536_s2 + $0x64] ss:$8 sps:$4 sm:$0xff]  }
  0x3a   :  { %186 = vmatprep.mubr.f32.mxu1 %v3698_v0  ;;  %439 = vmatpush1.bf16.msra.mxu1 %v3340_v21  ;;  %v3400_v19 = vld [vmem:[%s4536_s2 + $0x60] ss:$8 sps:$4 sm:$0xff]   ;;  %v3405_v20 = vld [vmem:[%s4536_s2 + $0x74] ss:$8 sps:$4 sm:$0xff]   ;;  %v3403_v21 = vld [vmem:[%s4536_s2 + $0x70] ss:$8 sps:$4 sm:$0xff]  }
  0x3b   :  { %440 = vmatprep.subr.bf16.mxu1 %v3345_v22  ;;  %v3408_v22 = vld [vmem:[%s4536_s2 + $0x84] ss:$8 sps:$4 sm:$0xff]  }
  0x3d   :  { %2714 = vmatmul.mubr.msk.f32.gmra.mrb[6].mxu1 %vm85_vm0, %v82_v23  ;;  %v3406_v23 = vld [vmem:[%s4536_s2 + $0x80] ss:$8 sps:$4 sm:$0xff]  }
  0x3e   :  { %192 = vmatprep.mubr.f32.mxu1 %v3698_v0  ;;  %441 = vmatpush1.bf16.msra.mxu1 %v3343_v24  ;;  %v3411_v24 = vld [vmem:[%s4536_s2 + $0x94] ss:$8 sps:$4 sm:$0xff]  }
  0x3f   :  { %442 = vmatprep.subr.bf16.mxu1 %v3348_v25  ;;  %v3409_v25 = vld [vmem:[%s4536_s2 + $0x90] ss:$8 sps:$4 sm:$0xff]  }
  0x41   :  { %2715 = vmatmul.mubr.msk.f32.gmra.mrb[8].mxu1 %vm85_vm0, %v83_v26  ;;  %v3414_v26 = vld [vmem:[%s4536_s2 + $0xa4] ss:$8 sps:$4 sm:$0xff]  }
  0x42   :  { %198 = vmatprep.mubr.f32.mxu1 %v3698_v0  ;;  %443 = vmatpush1.bf16.msra.mxu1 %v3346_v27  ;;  %v3412_v27 = vld [vmem:[%s4536_s2 + $0xa0] ss:$8 sps:$4 sm:$0xff]  }
  0x43   :  { %444 = vmatprep.subr.bf16.mxu1 %v3351_v28  ;;  %v3417_v28 = vld [vmem:[%s4536_s2 + $0xb4] ss:$8 sps:$4 sm:$0xff]  }
  0x45   :  { %2716 = vmatmul.mubr.msk.f32.gmra.mrb[10].mxu1 %vm85_vm0, %v84_v29  ;;  %v3415_v29 = vld [vmem:[%s4536_s2 + $0xb0] ss:$8 sps:$4 sm:$0xff]  }
  0x46   :  { %445 = vmatpush1.bf16.msra.mxu1 %v3349_v30  ;;  %v3420_v30 = vld [vmem:[%s4536_s2 + $0xc4] ss:$8 sps:$4 sm:$0xff]  }
  0x47   :  { %446 = vmatprep.subr.bf16.mxu1 %v3354_v31  ;;  %v3418_v31 = vld [vmem:[%s4536_s2 + $0xc0] ss:$8 sps:$4 sm:$0xff]  }
  0x4a   :  { %447 = vmatpush1.bf16.msra.mxu1 %v3352_v32  ;;  %v3423_v32 = vld [vmem:[%s4536_s2 + $0xd4] ss:$8 sps:$4 sm:$0xff]  }
  0x4b   :  { %448 = vmatprep.subr.bf16.mxu1 %v3357_v33  ;;  %v3421_v33 = vld [vmem:[%s4536_s2 + $0xd0] ss:$8 sps:$4 sm:$0xff]  }
  0x4e   :  { %449 = vmatpush1.bf16.msra.mxu1 %v3355_v34  ;;  %v3426_v34 = vld [vmem:[%s4536_s2 + $0xe4] ss:$8 sps:$4 sm:$0xff]  }
  0x4f   :  { %450 = vmatprep.subr.bf16.mxu1 %v3360_v35  ;;  %v3424_v35 = vld [vmem:[%s4536_s2 + $0xe0] ss:$8 sps:$4 sm:$0xff]  }
  0x52   :  { %451 = vmatpush1.bf16.msra.mxu1 %v3358_v36  ;;  %v3429_v36 = vld [vmem:[%s4536_s2 + $0xf4] ss:$8 sps:$4 sm:$0xff]  }
  0x53   :  { %452 = vmatprep.subr.bf16.mxu1 %v3363_v37  ;;  %v3427_v37 = vld [vmem:[%s4536_s2 + $0xf0] ss:$8 sps:$4 sm:$0xff]  }
  0x56   :  { %453 = vmatpush1.bf16.msra.mxu1 %v3361_v38  ;;  %v3432_v38 = vld [vmem:[%s4536_s2 + $0x204] ss:$8 sps:$4 sm:$0xff]  }
  0x57   :  { %454 = vmatprep.subr.bf16.mxu1 %v3366_v39  ;;  %v3430_v39 = vld [vmem:[%s4536_s2 + $0x200] ss:$8 sps:$4 sm:$0xff]  }
  0x5a   :  { %455 = vmatpush1.bf16.msra.mxu1 %v3364_v40  ;;  %v3435_v40 = vld [vmem:[%s4536_s2 + $0x214] ss:$8 sps:$4 sm:$0xff]  }
  0x5b   :  { %456 = vmatprep.subr.bf16.mxu1 %v3369_v41  ;;  %v3433_v41 = vld [vmem:[%s4536_s2 + $0x210] ss:$8 sps:$4 sm:$0xff]  }
  0x5e   :  { %457 = vmatpush1.bf16.msra.mxu1 %v3367_v42  ;;  %v3438_v42 = vld [vmem:[%s4536_s2 + $0x224] ss:$8 sps:$4 sm:$0xff]  }
  0x5f   :  { %458 = vmatprep.subr.bf16.mxu1 %v3372_v43  ;;  %v3436_v43 = vld [vmem:[%s4536_s2 + $0x220] ss:$8 sps:$4 sm:$0xff]  }
  0x62   :  { %459 = vmatpush1.bf16.msra.mxu1 %v3370_v44  ;;  %v3441_v44 = vld [vmem:[%s4536_s2 + $0x234] ss:$8 sps:$4 sm:$0xff]  }
  0x63   :  { %460 = vmatprep.subr.bf16.mxu1 %v3375_v45  ;;  %v3439_v45 = vld [vmem:[%s4536_s2 + $0x230] ss:$8 sps:$4 sm:$0xff]  }
  0x66   :  { %461 = vmatpush1.bf16.msra.mxu1 %v3373_v46  ;;  %v3444_v46 = vld [vmem:[%s4536_s2 + $0x244] ss:$8 sps:$4 sm:$0xff]  }
  0x67   :  { %462 = vmatprep.subr.bf16.mxu1 %v3378_v47  ;;  %v3442_v47 = vld [vmem:[%s4536_s2 + $0x240] ss:$8 sps:$4 sm:$0xff]  }
  0x6a   :  { %463 = vmatpush1.bf16.msra.mxu1 %v3376_v48  ;;  %v3447_v48 = vld [vmem:[%s4536_s2 + $0x254] ss:$8 sps:$4 sm:$0xff]  }
  0x6b   :  { %464 = vmatprep.subr.bf16.mxu1 %v3381_v49  ;;  %v3445_v49 = vld [vmem:[%s4536_s2 + $0x250] ss:$8 sps:$4 sm:$0xff]  }
  0x6e   :  { %465 = vmatpush1.bf16.msra.mxu1 %v3379_v50  ;;  %v3450_v50 = vld [vmem:[%s4536_s2 + $0x264] ss:$8 sps:$4 sm:$0xff]  }
  0x6f   :  { %637 = vmatprep.subr.bf16.mxu1 %v3384_v51  ;;  %v3448_v51 = vld [vmem:[%s4536_s2 + $0x260] ss:$8 sps:$4 sm:$0xff]  }
 0x104   :  { %v3956_v52 = vpop.f32.mrb[0].mxu1 }
 0x105   :  { %v172_v53 = vpop.f32.mrb[1].mxu1 }
 0x108   :  { %v3958_v54 = vpop.f32.mrb[2].mxu1 }
 0x109   :  { %v205_v55 = vpack.c.bf16 %v3958_v54, %v3956_v52  ;;  %v178_v56 = vpop.f32.mrb[3].mxu1  ;;  %v3453_v52 = vld [vmem:[%s4536_s2 + $0x274] ss:$8 sps:$4 sm:$0xff]   ;;  %v3456_v54 = vld [vmem:[%s4536_s2 + $0x284] ss:$8 sps:$4 sm:$0xff]  }
 0x10a   :  { %v206_v57 = vpack.c.bf16 %v178_v56, %v172_v53  ;;  %v3451_v53 = vld [vmem:[%s4536_s2 + $0x270] ss:$8 sps:$4 sm:$0xff]   ;;  %v3459_v56 = vld [vmem:[%s4536_s2 + $0x294] ss:$8 sps:$4 sm:$0xff]  }
 0x10c   :  { %v182_v58 = vpop.f32.mrb[4].mxu1 }
 0x10d   :  { %v184_v59 = vpop.f32.mrb[5].mxu1 }
 0x110   :  { %v188_v60 = vpop.f32.mrb[6].mxu1 }
 0x111   :  { %v239_v61 = vpack.c.bf16 %v188_v60, %v182_v58  ;;  %v190_v62 = vpop.f32.mrb[7].mxu1  ;;  %v3462_v58 = vld [vmem:[%s4536_s2 + $0x2a4] ss:$8 sps:$4 sm:$0xff]   ;;  %v3465_v60 = vld [vmem:[%s4536_s2 + $0x2b4] ss:$8 sps:$4 sm:$0xff]  }
 0x112   :  { %v240_v63 = vpack.c.bf16 %v190_v62, %v184_v59  ;;  %v3460_v59 = vld [vmem:[%s4536_s2 + $0x2a0] ss:$8 sps:$4 sm:$0xff]   ;;  %v3468_v62 = vld [vmem:[%s4536_s2 + $0x2c4] ss:$8 sps:$4 sm:$0xff]  }
 0x114   :  { %466 = vmatprep.mubr.bf16.mxu1 %v240_v63  ;;  %v3968_v3 = vpop.f32.mrb[8].mxu1  ;;  %v3466_v63 = vld [vmem:[%s4536_s2 + $0x2c0] ss:$8 sps:$4 sm:$0xff]  }
 0x115   :  { %467 = vmatmul.mubr.bf16.vlgmr.msra.gmra.mrb[12].mxu1 %v239_v61  ;;  %v3970_v4 = vpop.f32.mrb[9].mxu1  ;;  %v3463_v61 = vld [vmem:[%s4536_s2 + $0x2b0] ss:$8 sps:$4 sm:$0xff]  }
 0x116   :  { %638 = vmatpush1.bf16.msra.mxu1 %v3382_v1  ;;  %669 = vmatprep.mubr.bf16.mxu1 %v206_v57  ;;  %v3457_v57 = vld [vmem:[%s4536_s2 + $0x290] ss:$8 sps:$4 sm:$0xff]   ;;  %v3471_v1 = vld [vmem:[%s4536_s2 + $0x2d4] ss:$8 sps:$4 sm:$0xff]  }
 0x117   :  { %639 = vmatprep.subr.bf16.mxu1 %v3387_v2  ;;  %v3469_v2 = vld [vmem:[%s4536_s2 + $0x2d0] ss:$8 sps:$4 sm:$0xff]  }
 0x118   :  { %v3978_v7 = vpop.f32.mrb[10].mxu1 }
 0x119   :  { %v680_v8 = vpack.c.bf16 %v3978_v7, %v3968_v3  ;;  %v3982_v9 = vpop.f32.mrb[11].mxu1 }
 0x11a   :  { %640 = vmatpush1.bf16.msra.mxu1 %v3385_v5  ;;  %v681_v11 = vpack.c.bf16 %v3982_v9, %v3970_v4  ;;  %v3474_v4 = vld [vmem:[%s4536_s2 + $0x2e4] ss:$8 sps:$4 sm:$0xff]   ;;  %v3472_v5 = vld [vmem:[%s4536_s2 + $0x2e0] ss:$8 sps:$4 sm:$0xff]   ;;  %v3475_v9 = vld [vmem:[%s4536_s2 + $0x2f0] ss:$8 sps:$4 sm:$0xff]  }
 0x11b   :  { %641 = vmatprep.subr.bf16.mxu1 %v3390_v6  ;;  %v3477_v6 = vld [vmem:[%s4536_s2 + $0x2f4] ss:$8 sps:$4 sm:$0xff]  }
 0x11e   :  { %642 = vmatpush1.bf16.msra.mxu1 %v3388_v10  ;;  %v924_v10 = vlaneseq }
 0x11f   :  { %643 = vmatprep.subr.bf16.mxu1 %v3393_v12 }
 0x122   :  { %644 = vmatpush1.bf16.msra.mxu1 %v3391_v13  ;;  %v922_v13 = vld [vmem:[%s4537_s3] sm:$0x3] }
 0x123   :  { %645 = vmatprep.subr.bf16.mxu1 %v3396_v14 }
 0x126   :  { %646 = vmatpush1.bf16.msra.mxu1 %v3394_v15 }
 0x127   :  { %647 = vmatprep.subr.bf16.mxu1 %v3399_v16 }
 0x12a   :  { %648 = vmatpush1.bf16.msra.mxu1 %v3397_v17 }
 0x12b   :  { %649 = vmatprep.subr.bf16.mxu1 %v3402_v18 }
 0x12e   :  { %650 = vmatpush1.bf16.msra.mxu1 %v3400_v19 }
 0x12f   :  { %651 = vmatprep.subr.bf16.mxu1 %v3405_v20 }
 0x132   :  { %652 = vmatpush1.bf16.msra.mxu1 %v3403_v21 }
 0x133   :  { %653 = vmatprep.subr.bf16.mxu1 %v3408_v22 }
 0x136   :  { %654 = vmatpush1.bf16.msra.mxu1 %v3406_v23 }
 0x137   :  { %655 = vmatprep.subr.bf16.mxu1 %v3411_v24 }
 0x13a   :  { %656 = vmatpush1.bf16.msra.mxu1 %v3409_v25 }
 0x13b   :  { %657 = vmatprep.subr.bf16.mxu1 %v3414_v26 }
 0x13e   :  { %658 = vmatpush1.bf16.msra.mxu1 %v3412_v27 }
 0x13f   :  { %659 = vmatprep.subr.bf16.mxu1 %v3417_v28  ;;  %v3478_v28 = vld [vmem:[%s4539_s5 + $0xc0] sm:$0xff]  }
 0x142   :  { %660 = vmatpush1.bf16.msra.mxu1 %v3415_v29  ;;  %v942_v29 = vld [vmem:[%s4538_s4] sm:$0xff] }
 0x143   :  { %661 = vmatprep.subr.bf16.mxu1 %v3420_v30  ;;  %v3479_v30 = vld [vmem:[%s4539_s5 + $0x80] sm:$0xff]  }
 0x146   :  { %662 = vmatpush1.bf16.msra.mxu1 %v3418_v31  ;;  %v3480_v31 = vld [vmem:[%s4539_s5 + $0xc8] sm:$0xff]  }
 0x147   :  { %663 = vmatprep.subr.bf16.mxu1 %v3423_v32  ;;  %v943_v32 = vld [vmem:[%s4538_s4 + $0x8] sm:$0xff] }
 0x14a   :  { %664 = vmatpush1.bf16.msra.mxu1 %v3421_v33  ;;  %v3481_v33 = vld [vmem:[%s4539_s5 + $0x88] sm:$0xff]  }
 0x14b   :  { %665 = vmatprep.subr.bf16.mxu1 %v3426_v34  ;;  %v3482_v34 = vld [vmem:[%s4539_s5 + $0xd0] sm:$0xff]  }
 0x14e   :  { %666 = vmatpush1.bf16.msra.mxu1 %v3424_v35  ;;  %v944_v35 = vld [vmem:[%s4538_s4 + $0x10] sm:$0xff] }
 0x14f   :  { %667 = vmatprep.subr.bf16.mxu1 %v3429_v36  ;;  %v3483_v36 = vld [vmem:[%s4539_s5 + $0x90] sm:$0xff]  }
 0x152   :  { %668 = vmatpush1.bf16.msra.mxu1 %v3427_v37  ;;  %v3484_v37 = vld [vmem:[%s4539_s5 + $0xd8] sm:$0xff]  }
 0x153   :  { %875 = vmatprep.subr.bf16.mxu1 %v3432_v38  ;;  %v3485_v38 = vld [vmem:[%s4539_s5 + $0x98] sm:$0xff]  }
 0x155   :  { %670 = vmatmul.mubr.bf16.vlgmr.msra.gmra.mrb[12].mxu1 %v205_v55  ;;  %v3454_v55 = vld [vmem:[%s4536_s2 + $0x280] ss:$8 sps:$4 sm:$0xff]  }
 0x156   :  { %876 = vmatpush1.bf16.msra.mxu1 %v3430_v39  ;;  %907 = vmatprep.mubr.bf16.mxu1 %v681_v11  ;;  %v4169_v11 = vshrl.u32 %v924_v10, 7  ;;  %v3486_v39 = vld [vmem:[%s4539_s5 + $0xe0] sm:$0xff]   ;;  %v3508_v10 = vld [vmem:[%s4539_s5 + $0x78] sm:$0xff]  }
 0x157   :  { %877 = vmatprep.subr.bf16.mxu1 %v3435_v40  ;;  %v3487_v40 = vld [vmem:[%s4539_s5 + $0xa0] sm:$0xff]  }
 0x158   :  { %v926_v12 = vsub.s32 0, %v4169_v11  ;;  %v930_v14 = vsub.s32 1, %v4169_v11  ;;  %v3601_v11 = vld [vmem:[%s4545_s11 + $0x80] sm:$0xff]  }
 0x15a   :  { %878 = vmatpush1.bf16.msra.mxu1 %v3433_v41  ;;  %v927_v15 = vrot.slane %v922_v13, %v926_v12  ;;  %v931_v16 = vrot.slane %v922_v13, %v930_v14  ;;  %v3488_v41 = vld [vmem:[%s4539_s5 + $0xe8] sm:$0xff]   ;;  %v3509_v13 = vld [vmem:[%s4539_s5 + $0x38] sm:$0xff]  }
 0x15b   :  { %879 = vmatprep.subr.bf16.mxu1 %v3438_v42  ;;  %v3489_v42 = vld [vmem:[%s4539_s5 + $0xa8] sm:$0xff]  }
 0x15e   :  { %880 = vmatpush1.bf16.msra.mxu1 %v3436_v43  ;;  %v3490_v43 = vld [vmem:[%s4539_s5 + $0xf0] sm:$0xff]  }
 0x15f   :  { %881 = vmatprep.subr.bf16.mxu1 %v3441_v44  ;;  %v3491_v44 = vld [vmem:[%s4539_s5 + $0xb0] sm:$0xff]  }
 0x162   :  { %882 = vmatpush1.bf16.msra.mxu1 %v3439_v45  ;;  %v3492_v45 = vld [vmem:[%s4539_s5 + $0xf8] sm:$0xff]  }
 0x163   :  { %883 = vmatprep.subr.bf16.mxu1 %v3444_v46  ;;  %v3493_v46 = vld [vmem:[%s4539_s5 + $0xb8] sm:$0xff]  }
 0x166   :  { %884 = vmatpush1.bf16.msra.mxu1 %v3442_v47  ;;  %v3494_v47 = vld [vmem:[%s4539_s5 + $0x40] sm:$0xff]  }
 0x167   :  { %885 = vmatprep.subr.bf16.mxu1 %v3447_v48 }
 0x16a   :  { %886 = vmatpush1.bf16.msra.mxu1 %v3445_v49 }
 0x16b   :  { %887 = vmatprep.subr.bf16.mxu1 %v3450_v50 }
 0x16e   :  { %888 = vmatpush1.bf16.msra.mxu1 %v3448_v51 }
 0x16f   :  { %889 = vmatprep.subr.bf16.mxu1 %v3453_v52 }
 0x172   :  { %890 = vmatpush1.bf16.msra.mxu1 %v3451_v53  ;;  %v3495_v53 = vld [vmem:[%s4539_s5] sm:$0xff]  }
 0x173   :  { %891 = vmatprep.subr.bf16.mxu1 %v3456_v54 }
 0x176   :  { %892 = vmatpush1.bf16.msra.mxu1 %v3454_v55  ;;  %v3496_v55 = vld [vmem:[%s4539_s5 + $0x48] sm:$0xff]  }
 0x177   :  { %893 = vmatprep.subr.bf16.mxu1 %v3459_v56 }
 0x17a   :  { %894 = vmatpush1.bf16.msra.mxu1 %v3457_v57 }
 0x17b   :  { %895 = vmatprep.subr.bf16.mxu1 %v3462_v58 }
 0x17e   :  { %896 = vmatpush1.bf16.msra.mxu1 %v3460_v59  ;;  %v3497_v59 = vld [vmem:[%s4539_s5 + $0x8] sm:$0xff]  }
 0x17f   :  { %897 = vmatprep.subr.bf16.mxu1 %v3465_v60  ;;  %v3498_v60 = vld [vmem:[%s4539_s5 + $0x50] sm:$0xff]  }
 0x182   :  { %898 = vmatpush1.bf16.msra.mxu1 %v3463_v61  ;;  %v3499_v61 = vld [vmem:[%s4539_s5 + $0x10] sm:$0xff]  }
 0x183   :  { %899 = vmatprep.subr.bf16.mxu1 %v3468_v62  ;;  %v3500_v62 = vld [vmem:[%s4539_s5 + $0x58] sm:$0xff]  }
 0x186   :  { %900 = vmatpush1.bf16.msra.mxu1 %v3466_v63  ;;  %v3501_v63 = vld [vmem:[%s4539_s5 + $0x18] sm:$0xff]  }
 0x187   :  { %901 = vmatprep.subr.bf16.mxu1 %v3471_v1  ;;  %v3502_v1 = vld [vmem:[%s4539_s5 + $0x60] sm:$0xff]  }
 0x18a   :  { %902 = vmatpush1.bf16.msra.mxu1 %v3469_v2  ;;  %v3503_v2 = vld [vmem:[%s4539_s5 + $0x20] sm:$0xff]  }
 0x18b   :  { %903 = vmatprep.subr.bf16.mxu1 %v3474_v4  ;;  %v3504_v4 = vld [vmem:[%s4539_s5 + $0x68] sm:$0xff]  }
 0x18e   :  { %904 = vmatpush1.bf16.msra.mxu1 %v3472_v5  ;;  %v3505_v5 = vld [vmem:[%s4539_s5 + $0x28] sm:$0xff]  }
 0x18f   :  { %905 = vmatprep.subr.bf16.mxu1 %v3477_v6  ;;  %v3506_v6 = vld [vmem:[%s4539_s5 + $0x70] sm:$0xff]  }
 0x192   :  { %906 = vmatpush1.bf16.msra.mxu1 %v3475_v9  ;;  %v3507_v9 = vld [vmem:[%s4539_s5 + $0x30] sm:$0xff]  }
 0x195   :  { %908 = vmatmul.mubr.bf16.vlgmr.msra.gmra.mrb[12].mxu1 %v680_v8 }
 0x268   :  { %v909_v17 = vpop.f32.mrb[12].mxu1 }
 0x269   :  { %v934_v3 = vadd.f32 %v927_v15, %v909_v17  ;;  %v911_v7 = vpop.f32.mrb[13].mxu1 }
 0x26a   :  { %v935_v8 = vadd.f32 %v931_v16, %v911_v7  ;;  %v913_v18 = vpop.f32.mrb[14].mxu1  ;;  %v3512_v7 = vld [vmem:[%s4539_s5 + $0x148] sm:$0xff]  }
 0x26b   :  { %v936_v19 = vadd.f32 %v927_v15, %v913_v18  ;;  %v915_v20 = vpop.f32.mrb[15].mxu1  ;;  %v938_v22 = vmax.f32 %v934_v3, 0.0  ;;  %v3510_v15 = vld [vmem:[%s4539_s5 + $0x140] sm:$0xff]   ;;  %v3514_v18 = vld [vmem:[%s4539_s5 + $0x150] sm:$0xff]  }
 0x26c   :  { %v937_v21 = vadd.f32 %v931_v16, %v915_v20  ;;  %v939_v24 = vmax.f32 %v935_v8, 0.0  ;;  %v3511_v16 = vld [vmem:[%s4539_s5 + $0x100] sm:$0xff]   ;;  %v3513_v8 = vld [vmem:[%s4539_s5 + $0x108] sm:$0xff]   ;;  %v3516_v20 = vld [vmem:[%s4539_s5 + $0x158] sm:$0xff]  }
 0x26d   :  { %v940_v23 = vmax.f32 %v936_v19, 0.0  ;;  %v3515_v19 = vld [vmem:[%s4539_s5 + $0x110] sm:$0xff]  }
 0x26e   :  { %v941_v25 = vmax.f32 %v937_v21, 0.0  ;;  %v3517_v21 = vld [vmem:[%s4539_s5 + $0x118] sm:$0xff]  }
 0x26f   :  { %v3317_v26 = vpack.c.bf16 %v940_v23, %v938_v22  ;;  %v3518_v22 = vld [vmem:[%s4539_s5 + $0x160] sm:$0xff]  }
 0x270   :  { %v3315_v27 = vpack.c.bf16 %v941_v25, %v939_v24  ;;  %v3519_v23 = vld [vmem:[%s4539_s5 + $0x120] sm:$0xff]   ;;  %v3520_v24 = vld [vmem:[%s4539_s5 + $0x168] sm:$0xff]  }
 0x271   :  { %v3521_v25 = vld [vmem:[%s4539_s5 + $0x128] sm:$0xff]  }
 0x272   :  { %3316 = vmatprep.subr.bf16.mxu0 %v3315_v27  ;;  %v3523_v27 = vld [vmem:[%s4539_s5 + $0x130] sm:$0xff]  }
 0x273   :  { %3318 = vmatpush1.bf16.msra.mxu0 %v3317_v26  ;;  %v3522_v26 = vld [vmem:[%s4539_s5 + $0x170] sm:$0xff]  }
 0x274   :  { %3160 = vmatprep.subr.bf16.mxu0 %v3478_v28  ;;  %v3524_v28 = vld [vmem:[%s4539_s5 + $0x178] sm:$0xff]  }
 0x276   :  { %2877 = vmatmul.mubr.msk.f32.vlgmr.msra.gmra.mrb[0].mxu0 %vm945_vm1, %v942_v29  ;;  %v3525_v29 = vld [vmem:[%s4539_s5 + $0x138] sm:$0xff]  }
 0x277   :  { %1025 = vmatprep.mubr.f32.mxu0 %v3698_v0  ;;  %3161 = vmatpush3.bf16.msra.mxu0 %v3479_v30 }
 0x278   :  { %3162 = vmatprep.subr.bf16.mxu0 %v3480_v31 }
 0x27a   :  { %2878 = vmatmul.mubr.msk.f32.gmra.mrb[2].mxu0 %vm945_vm1, %v943_v32 }
 0x27b   :  { %1031 = vmatprep.mubr.f32.mxu0 %v3698_v0  ;;  %3163 = vmatpush3.bf16.msra.mxu0 %v3481_v33 }
 0x27c   :  { %3164 = vmatprep.subr.bf16.mxu0 %v3482_v34 }
 0x27e   :  { %2879 = vmatmul.mubr.msk.f32.gmra.mrb[4].mxu0 %vm945_vm1, %v944_v35 }
 0x27f   :  { %3165 = vmatpush3.bf16.msra.mxu0 %v3483_v36 }
 0x280   :  { %3166 = vmatprep.subr.bf16.mxu0 %v3484_v37 }
 0x283   :  { %3167 = vmatpush3.bf16.msra.mxu0 %v3485_v38 }
 0x284   :  { %3168 = vmatprep.subr.bf16.mxu0 %v3486_v39 }
 0x287   :  { %3169 = vmatpush3.bf16.msra.mxu0 %v3487_v40 }
 0x288   :  { %3170 = vmatprep.subr.bf16.mxu0 %v3488_v41 }
 0x28b   :  { %3171 = vmatpush3.bf16.msra.mxu0 %v3489_v42 }
 0x28c   :  { %3172 = vmatprep.subr.bf16.mxu0 %v3490_v43 }
 0x28f   :  { %3173 = vmatpush3.bf16.msra.mxu0 %v3491_v44 }
 0x290   :  { %3174 = vmatprep.subr.bf16.mxu0 %v3492_v45 }
 0x293   :  { %3175 = vmatpush3.bf16.msra.mxu0 %v3493_v46  ;;  %v2992_v46 = vld [vmem:[#allocation2] ss:$0 sm:$0xff] }
 0x294   :  { %3182 = vmatprep.subr.bf16.mxu0 %v3494_v47 }
 0x349   :  { %v1021_v48 = vpop.f32.mrb[0].mxu0 }
 0x34a   :  { %v1023_v49 = vpop.f32.mrb[1].mxu0  ;;  %v1038_v3 = vpack.c.bf16 %v1021_v48, %v1021_v48 }
 0x34b   :  { %v1039_v56 = vpack.c.bf16 %v1023_v49, %v1023_v49 }
 0x34d   :  { %v1027_v50 = vpop.f32.mrb[2].mxu0 }
 0x34e   :  { %v1029_v51 = vpop.f32.mrb[3].mxu0  ;;  %v1072_v54 = vpack.c.bf16 %v1027_v50, %v1027_v50  ;;  %v3528_v50 = vld [vmem:[#allocation4 + $0x84] ss:$8 sps:$4 sm:$0xff]  }
 0x34f   :  { %v1073_v52 = vpack.c.bf16 %v1029_v51, %v1029_v51 }
 0x351   :  { %1235 = vmatprep.mubr.bf16.mxu0 %v1073_v52  ;;  %v4251_v57 = vpop.f32.mrb[4].mxu0  ;;  %v1560_v52 = vld [vmem:[%s4541_s7] sm:$0xff] }
 0x352   :  { %1236 = vmatmul.mubr.bf16.vlgmr.msra.gmra.mrb[8].mxu0 %v1072_v54  ;;  %v1035_v58 = vpop.f32.mrb[5].mxu0  ;;  %v1379_v30 = vpack.c.bf16 %v4251_v57, %v4251_v57  ;;  %v3531_v54 = vld [vmem:[#allocation4 + $0x94] ss:$8 sps:$4 sm:$0xff]   ;;  %v3534_v57 = vld [vmem:[#allocation4 + $0xa4] ss:$8 sps:$4 sm:$0xff]  }
 0x353   :  { %3183 = vmatpush3.bf16.msra.mxu0 %v3495_v53  ;;  %1371 = vmatprep.mubr.bf16.mxu0 %v1039_v56  ;;  %v1380_v17 = vpack.c.bf16 %v1035_v58, %v1035_v58  ;;  %v3526_v53 = vld [vmem:[#allocation4 + $0x80] ss:$8 sps:$4 sm:$0xff]   ;;  %v3529_v56 = vld [vmem:[#allocation4 + $0x90] ss:$8 sps:$4 sm:$0xff]  }
 0x354   :  { %3184 = vmatprep.subr.bf16.mxu0 %v3496_v55  ;;  %v1561_v55 = vld [vmem:[%s4541_s7 + $0x8] sm:$0xff]  ;;  %v1562_v58 = vld [vmem:[%s4541_s7 + $0x10] sm:$0xff] }
 0x357   :  { %3185 = vmatpush3.bf16.msra.mxu0 %v3497_v59  ;;  %v3532_v59 = vld [vmem:[#allocation4 + $0xa0] ss:$8 sps:$4 sm:$0xff]  }
 0x358   :  { %3186 = vmatprep.subr.bf16.mxu0 %v3498_v60  ;;  %v3537_v60 = vld [vmem:[#allocation4 + $0xb4] ss:$8 sps:$4 sm:$0xff]  }
 0x35b   :  { %3187 = vmatpush3.bf16.msra.mxu0 %v3499_v61  ;;  %v3535_v61 = vld [vmem:[#allocation4 + $0xb0] ss:$8 sps:$4 sm:$0xff]  }
 0x35c   :  { %3188 = vmatprep.subr.bf16.mxu0 %v3500_v62  ;;  %v3540_v62 = vld [vmem:[#allocation4 + $0xc4] ss:$8 sps:$4 sm:$0xff]  }
 0x35f   :  { %3189 = vmatpush3.bf16.msra.mxu0 %v3501_v63  ;;  %v3538_v63 = vld [vmem:[#allocation4 + $0xc0] ss:$8 sps:$4 sm:$0xff]  }
 0x360   :  { %3190 = vmatprep.subr.bf16.mxu0 %v3502_v1  ;;  %v3543_v1 = vld [vmem:[#allocation4 + $0xd4] ss:$8 sps:$4 sm:$0xff]  }
 0x363   :  { %3191 = vmatpush3.bf16.msra.mxu0 %v3503_v2  ;;  %v3541_v2 = vld [vmem:[#allocation4 + $0xd0] ss:$8 sps:$4 sm:$0xff]  }
 0x364   :  { %3192 = vmatprep.subr.bf16.mxu0 %v3504_v4  ;;  %v3546_v4 = vld [vmem:[#allocation4 + $0xe4] ss:$8 sps:$4 sm:$0xff]  }
 0x367   :  { %3193 = vmatpush3.bf16.msra.mxu0 %v3505_v5  ;;  %v3544_v5 = vld [vmem:[#allocation4 + $0xe0] ss:$8 sps:$4 sm:$0xff]  }
 0x368   :  { %3194 = vmatprep.subr.bf16.mxu0 %v3506_v6  ;;  %v3549_v6 = vld [vmem:[#allocation4 + $0xf4] ss:$8 sps:$4 sm:$0xff]  }
 0x36b   :  { %3195 = vmatpush3.bf16.msra.mxu0 %v3507_v9  ;;  %v3547_v9 = vld [vmem:[#allocation4 + $0xf0] ss:$8 sps:$4 sm:$0xff]  }
 0x36c   :  { %3196 = vmatprep.subr.bf16.mxu0 %v3508_v10  ;;  %v3552_v10 = vld [vmem:[#allocation4 + $0x104] ss:$8 sps:$4 sm:$0xff]  }
 0x36d   :  { %2028 = vmatprep.subr.bf16.mxu1 %v3552_v10 }
 0x36f   :  { %3197 = vmatpush3.bf16.msra.mxu0 %v3509_v13  ;;  %v3550_v13 = vld [vmem:[#allocation4 + $0x100] ss:$8 sps:$4 sm:$0xff]  }
 0x370   :  { %3204 = vmatprep.subr.bf16.mxu0 %v3510_v15  ;;  %v3555_v15 = vld [vmem:[#allocation4 + $0x4] ss:$8 sps:$4 sm:$0xff]   ;;  %2029 = vmatpush1.bf16.msra.mxu1 %v3550_v13 }
 0x372   :  { %1372 = vmatmul.mubr.bf16.vlgmr.msra.gmra.mrb[12].mxu0 %v1038_v3  ;;  %v3558_v3 = vld [vmem:[#allocation4 + $0x114] ss:$8 sps:$4 sm:$0xff]  }
 0x373   :  { %3205 = vmatpush3.bf16.msra.mxu0 %v3511_v16  ;;  %1542 = vmatprep.mubr.bf16.mxu0 %v1380_v17  ;;  %v3700_v16 = vmov 0   ;;  %v3556_v17 = vld [vmem:[#allocation4 + $0x110] ss:$8 sps:$4 sm:$0xff]  }
 0x374   :  { %3206 = vmatprep.subr.bf16.mxu0 %v3512_v7  ;;  %2060 = vmatprep.mubr.bf16.mxu1 %v3700_v16  ;;  %v3562_v7 = vld [vmem:[#allocation4 + $0x120] ss:$8 sps:$4 sm:$0xff]  }
 0x375   :  { %2030 = vmatprep.subr.bf16.mxu1 %v3558_v3 }
 0x376   :  { %2031 = vmatpush1.bf16.msra.mxu1 %v3556_v17  ;;  %v2071_v17 = vld [vmem:[%s4543_s9] sm:$0x3] }
 0x377   :  { %3207 = vmatpush3.bf16.msra.mxu0 %v3513_v8  ;;  %v3564_v8 = vld [vmem:[#allocation4 + $0x124] ss:$8 sps:$4 sm:$0xff]  }
 0x378   :  { %3208 = vmatprep.subr.bf16.mxu0 %v3514_v18  ;;  %2032 = vmatprep.subr.bf16.mxu1 %v3564_v8  ;;  %v3568_v18 = vld [vmem:[#allocation4 + $0x130] ss:$8 sps:$4 sm:$0xff]   ;;  %v2076_v8 = vrot.slane %v2071_v17, %v926_v12  ;;  %v2087_v12 = vld [vmem:[%s4544_s10] sm:$0xff] }
 0x37a   :  { %2033 = vmatpush1.bf16.msra.mxu1 %v3562_v7 }
 0x37b   :  { %3209 = vmatpush3.bf16.msra.mxu0 %v3515_v19  ;;  %v3570_v19 = vld [vmem:[#allocation4 + $0x134] ss:$8 sps:$4 sm:$0xff]  }
 0x37c   :  { %3210 = vmatprep.subr.bf16.mxu0 %v3516_v20  ;;  %2034 = vmatprep.subr.bf16.mxu1 %v3570_v19  ;;  %v3574_v20 = vld [vmem:[#allocation4 + $0x140] ss:$8 sps:$4 sm:$0xff]  }
 0x37e   :  { %2035 = vmatpush1.bf16.msra.mxu1 %v3568_v18 }
 0x37f   :  { %3211 = vmatpush3.bf16.msra.mxu0 %v3517_v21  ;;  %v3576_v21 = vld [vmem:[#allocation4 + $0x144] ss:$8 sps:$4 sm:$0xff]  }
 0x380   :  { %3212 = vmatprep.subr.bf16.mxu0 %v3518_v22  ;;  %2036 = vmatprep.subr.bf16.mxu1 %v3576_v21  ;;  %v3580_v22 = vld [vmem:[#allocation4 + $0x150] ss:$8 sps:$4 sm:$0xff]   ;;  %v2080_v21 = vrot.slane %v2071_v17, %v930_v14  ;;  %v3603_v14 = vld [vmem:[%s4545_s11 + $0xc8] sm:$0xff]  }
 0x382   :  { %2037 = vmatpush1.bf16.msra.mxu1 %v3574_v20 }
 0x383   :  { %3213 = vmatpush3.bf16.msra.mxu0 %v3519_v23  ;;  %v3582_v23 = vld [vmem:[#allocation4 + $0x154] ss:$8 sps:$4 sm:$0xff]  }
 0x384   :  { %3214 = vmatprep.subr.bf16.mxu0 %v3520_v24  ;;  %2038 = vmatprep.subr.bf16.mxu1 %v3582_v23  ;;  %v3586_v24 = vld [vmem:[#allocation4 + $0x160] ss:$8 sps:$4 sm:$0xff]  }
 0x386   :  { %2039 = vmatpush1.bf16.msra.mxu1 %v3580_v22 }
 0x387   :  { %3215 = vmatpush3.bf16.msra.mxu0 %v3521_v25  ;;  %v3588_v25 = vld [vmem:[#allocation4 + $0x164] ss:$8 sps:$4 sm:$0xff]  }
 0x388   :  { %3216 = vmatprep.subr.bf16.mxu0 %v3522_v26  ;;  %2040 = vmatprep.subr.bf16.mxu1 %v3588_v25  ;;  %v3592_v26 = vld [vmem:[#allocation4 + $0x170] ss:$8 sps:$4 sm:$0xff]  }
 0x38a   :  { %2041 = vmatpush1.bf16.msra.mxu1 %v3586_v24 }
 0x38b   :  { %3217 = vmatpush3.bf16.msra.mxu0 %v3523_v27  ;;  %v3594_v27 = vld [vmem:[#allocation4 + $0x174] ss:$8 sps:$4 sm:$0xff]  }
 0x38c   :  { %3218 = vmatprep.subr.bf16.mxu0 %v3524_v28  ;;  %2042 = vmatprep.subr.bf16.mxu1 %v3594_v27 }
 0x38e   :  { %2043 = vmatpush1.bf16.msra.mxu1 %v3592_v26 }
 0x38f   :  { %3219 = vmatpush3.bf16.msra.mxu0 %v3525_v29 }
 0x390   :  { %3296 = vmatprep.subr.mxu0 %v3698_v0 }
 0x392   :  { %1543 = vmatmul.mubr.bf16.vlgmr.msra.gmra.mrb[16].mxu0 %v1379_v30 }
 0x393   :  { %3298 = vmatprep.mubr.msk.f32.mxu0 %vm3699_vm2, %v3698_v0 }
 0x425   :  { %v3176_v31 = vpop.f32.mrb[8].mxu0 }
 0x426   :  { %v3177_v32 = vpop.f32.mrb[9].mxu0 }
 0x427   :  { %v3178_v33 = vadd.f32 %v3177_v32, %v3176_v31  ;;  %v3179_v34 = vpop.f32.mrb[10].mxu0  ;;  %v3553_v31 = vld [vmem:[#allocation4] ss:$8 sps:$4 sm:$0xff]  }
 0x428   :  { %v3180_v35 = vpop.f32.mrb[11].mxu0  ;;  %v3561_v34 = vld [vmem:[#allocation4 + $0x14] ss:$8 sps:$4 sm:$0xff]  }
 0x429   :  { %v3559_v35 = vld [vmem:[#allocation4 + $0x10] ss:$8 sps:$4 sm:$0xff]  }
 0x445   :  { %v3198_v36 = vpop.f32.mrb[12].mxu0 }
 0x446   :  { %v3199_v37 = vpop.f32.mrb[13].mxu0 }
 0x447   :  { %v3200_v38 = vadd.f32 %v3199_v37, %v3198_v36  ;;  %v3201_v39 = vpop.f32.mrb[14].mxu0  ;;  %v3567_v37 = vld [vmem:[#allocation4 + $0x24] ss:$8 sps:$4 sm:$0xff]  }
 0x448   :  { %v3202_v40 = vpop.f32.mrb[15].mxu0 }
 0x449   :  { %v1374_v41 = vadd.f32 %v3200_v38, %v3178_v33  ;;  %v3565_v40 = vld [vmem:[#allocation4 + $0x20] ss:$8 sps:$4 sm:$0xff]  }
 0x465   :  { %v3220_v42 = vpop.f32.mrb[16].mxu0 }
 0x466   :  { %v3221_v43 = vpop.f32.mrb[17].mxu0 }
 0x467   :  { %v3222_v44 = vadd.f32 %v3221_v43, %v3220_v42  ;;  %v3223_v45 = vpop.f32.mrb[18].mxu0  ;;  %v3571_v42 = vld [vmem:[#allocation4 + $0x30] ss:$8 sps:$4 sm:$0xff]   ;;  %v3579_v43 = vld [vmem:[#allocation4 + $0x44] ss:$8 sps:$4 sm:$0xff]  }
 0x468   :  { %v3224_v47 = vpop.f32.mrb[19].mxu0  ;;  %v3585_v45 = vld [vmem:[#allocation4 + $0x54] ss:$8 sps:$4 sm:$0xff]  }
 0x469   :  { %v1550_v48 = vadd.f32 %v3222_v44, %v1374_v41  ;;  %v3573_v41 = vld [vmem:[#allocation4 + $0x34] ss:$8 sps:$4 sm:$0xff]   ;;  %v3577_v44 = vld [vmem:[#allocation4 + $0x40] ss:$8 sps:$4 sm:$0xff]   ;;  %v3591_v47 = vld [vmem:[#allocation4 + $0x64] ss:$8 sps:$4 sm:$0xff]  }
 0x46b   :  { %v1558_v49 = vadd.f32 %v2992_v46, %v1550_v48  ;;  %v3583_v46 = vld [vmem:[#allocation4 + $0x50] ss:$8 sps:$4 sm:$0xff]   ;;  %v3589_v48 = vld [vmem:[#allocation4 + $0x60] ss:$8 sps:$4 sm:$0xff]  }
 0x46d   :  { %v1559_v51 = vmax.f32 %v1558_v49, 0.0  ;;  %v3597_v49 = vld [vmem:[#allocation4 + $0x74] ss:$8 sps:$4 sm:$0xff]  }
 0x46f   :  { %3297 = vmatpush3.msra.mxu0 %v1559_v51 }
 0x470   :  { %3299 = vmatmul.mubr.msk.f32.vlgmr.msra.gmra.mrb[6].mxu0 %vm1563_vm3, %v1560_v52  ;;  %1768 = vmatprep.subr.bf16.mxu0 %v3528_v50  ;;  %v3595_v50 = vld [vmem:[#allocation4 + $0x70] ss:$8 sps:$4 sm:$0xff]   ;;  %v3598_v52 = vld [vmem:[%s4545_s11 + $0x40] sm:$0xff]  }
 0x471   :  { %3301 = vmatprep.mubr.msk.f32.mxu0 %vm3699_vm2, %v3698_v0  ;;  %1769 = vmatpush1.bf16.msra.mxu0 %v3526_v53  ;;  %v3600_v53 = vld [vmem:[%s4545_s11] sm:$0xff]  }
 0x472   :  { %1770 = vmatprep.subr.bf16.mxu0 %v3531_v54  ;;  %v3602_v54 = vld [vmem:[%s4545_s11 + $0x48] sm:$0xff]   ;;  %3252 = vmatprep.subr.bf16.mxu1 %v3598_v52 }
 0x474   :  { %3302 = vmatmul.mubr.msk.f32.gmra.mrb[20].mxu0 %vm1563_vm3, %v1561_v55  ;;  %v3604_v55 = vld [vmem:[%s4545_s11 + $0x8] sm:$0xff]  }
 0x475   :  { %3304 = vmatprep.mubr.msk.f32.mxu0 %vm3699_vm2, %v3698_v0  ;;  %1771 = vmatpush1.bf16.msra.mxu0 %v3529_v56  ;;  %v3606_v56 = vld [vmem:[%s4545_s11 + $0x50] sm:$0xff]  }
 0x476   :  { %1772 = vmatprep.subr.bf16.mxu0 %v3534_v57  ;;  %v3608_v57 = vld [vmem:[%s4545_s11 + $0x10] sm:$0xff]  }
 0x478   :  { %3305 = vmatmul.mubr.msk.f32.gmra.mrb[22].mxu0 %vm1563_vm3, %v1562_v58  ;;  %v3610_v58 = vld [vmem:[%s4545_s11 + $0x58] sm:$0xff]  }
 0x479   :  { %1773 = vmatpush1.bf16.msra.mxu0 %v3532_v59  ;;  %1800 = vmatprep.mubr.bf16.mxu0 %v3700_v16  ;;  %v3612_v59 = vld [vmem:[%s4545_s11 + $0x18] sm:$0xff]  }
 0x47a   :  { %1774 = vmatprep.subr.bf16.mxu0 %v3537_v60  ;;  %v3614_v60 = vld [vmem:[%s4545_s11 + $0x60] sm:$0xff]  }
 0x47d   :  { %1775 = vmatpush1.bf16.msra.mxu0 %v3535_v61  ;;  %v3616_v61 = vld [vmem:[%s4545_s11 + $0x20] sm:$0xff]  }
 0x47e   :  { %1776 = vmatprep.subr.bf16.mxu0 %v3540_v62  ;;  %v3618_v62 = vld [vmem:[%s4545_s11 + $0x68] sm:$0xff]  }
 0x481   :  { %1777 = vmatpush1.bf16.msra.mxu0 %v3538_v63  ;;  %v3620_v63 = vld [vmem:[%s4545_s11 + $0x28] sm:$0xff]  }
 0x482   :  { %1778 = vmatprep.subr.bf16.mxu0 %v3543_v1  ;;  %v3622_v1 = vld [vmem:[%s4545_s11 + $0x70] sm:$0xff]  }
 0x485   :  { %1779 = vmatpush1.bf16.msra.mxu0 %v3541_v2  ;;  %v3624_v2 = vld [vmem:[%s4545_s11 + $0x30] sm:$0xff]  }
 0x486   :  { %1780 = vmatprep.subr.bf16.mxu0 %v3546_v4 }
 0x489   :  { %1781 = vmatpush1.bf16.msra.mxu0 %v3544_v5 }
 0x48a   :  { %1782 = vmatprep.subr.bf16.mxu0 %v3549_v6 }
 0x48d   :  { %1783 = vmatpush1.bf16.msra.mxu0 %v3547_v9 }
 0x48e   :  { %1889 = vmatprep.subr.bf16.mxu0 %v3555_v15 }
 0x543   :  { %v1639_v28 = vpop.f32.mrb[6].mxu0 }
 0x544   :  { %v3300_v29 = vpop.f32.mrb[7].mxu0  ;;  %v1653_v51 = vpack.c.bf16 %v1639_v28, %v1639_v28  ;;  %v3599_v28 = vld [vmem:[%s4545_s11 + $0xc0] sm:$0xff]  }
 0x547   :  { %v1644_v30 = vpop.f32.mrb[20].mxu0 }
 0x548   :  { %v1670_v32 = vpack.c.bf16 %v1644_v30, %v1644_v30  ;;  %v3303_v33 = vpop.f32.mrb[21].mxu0  ;;  %v2088_v30 = vld [vmem:[%s4544_s10 + $0x8] sm:$0xff] }
 0x549   :  { %v2089_v33 = vld [vmem:[%s4544_s10 + $0x10] sm:$0xff] }
 0x54a   :  { %1801 = vmatmul.mubr.bf16.vlgmr.msra.gmra.mrb[24].mxu0 %v1670_v32  ;;  %v3607_v32 = vld [vmem:[%s4545_s11 + $0xd0] sm:$0xff]  }
 0x54b   :  { %1890 = vmatpush1.bf16.msra.mxu0 %v3553_v31  ;;  %v1649_v36 = vpop.f32.mrb[22].mxu0  ;;  %1921 = vmatprep.mubr.bf16.mxu0 %v3700_v16  ;;  %v3605_v31 = vld [vmem:[%s4545_s11 + $0x88] sm:$0xff]  }
 0x54c   :  { %1891 = vmatprep.subr.bf16.mxu0 %v3561_v34  ;;  %v1930_v38 = vpack.c.bf16 %v1649_v36, %v1649_v36  ;;  %v3306_v39 = vpop.f32.mrb[23].mxu0  ;;  %v3609_v34 = vld [vmem:[%s4545_s11 + $0x90] sm:$0xff]   ;;  %v3615_v36 = vld [vmem:[%s4545_s11 + $0xe0] sm:$0xff]  }
 0x54d   :  { %v3621_v39 = vld [vmem:[%s4545_s11 + $0xa8] sm:$0xff]  }
 0x54e   :  { %2061 = vmatmul.mubr.bf16.vlgmr.msra.gmra.mrb[16].mxu1 %v1930_v38  ;;  %v3619_v38 = vld [vmem:[%s4545_s11 + $0xe8] sm:$0xff]  }
 0x54f   :  { %1892 = vmatpush1.bf16.msra.mxu0 %v3559_v35  ;;  %3253 = vmatpush3.bf16.msra.mxu1 %v3600_v53  ;;  %v3611_v35 = vld [vmem:[%s4545_s11 + $0xd8] sm:$0xff]  }
 0x550   :  { %1893 = vmatprep.subr.bf16.mxu0 %v3567_v37  ;;  %3254 = vmatprep.subr.bf16.mxu1 %v3602_v54  ;;  %v3617_v37 = vld [vmem:[%s4545_s11 + $0xa0] sm:$0xff]  }
 0x551   :  { %v3631_v54 = vld [vmem:[%s4545_s11 + $0x100] sm:$0xff]  }
 0x553   :  { %1894 = vmatpush1.bf16.msra.mxu0 %v3565_v40  ;;  %3255 = vmatpush3.bf16.msra.mxu1 %v3604_v55  ;;  %v3623_v40 = vld [vmem:[%s4545_s11 + $0xf0] sm:$0xff]  }
 0x554   :  { %1895 = vmatprep.subr.bf16.mxu0 %v3573_v41  ;;  %3256 = vmatprep.subr.bf16.mxu1 %v3606_v56  ;;  %v3625_v41 = vld [vmem:[%s4545_s11 + $0xb0] sm:$0xff]   ;;  %v3632_v56 = vld [vmem:[%s4545_s11 + $0x148] sm:$0xff]  }
 0x557   :  { %1896 = vmatpush1.bf16.msra.mxu0 %v3571_v42  ;;  %3257 = vmatpush3.bf16.msra.mxu1 %v3608_v57  ;;  %v3626_v42 = vld [vmem:[%s4545_s11 + $0x78] sm:$0xff]  }
 0x558   :  { %1897 = vmatprep.subr.bf16.mxu0 %v3579_v43  ;;  %3258 = vmatprep.subr.bf16.mxu1 %v3610_v58  ;;  %v3628_v43 = vld [vmem:[%s4545_s11 + $0x38] sm:$0xff]  }
 0x55b   :  { %1898 = vmatpush1.bf16.msra.mxu0 %v3577_v44  ;;  %3259 = vmatpush3.bf16.msra.mxu1 %v3612_v59  ;;  %v3627_v44 = vld [vmem:[%s4545_s11 + $0xf8] sm:$0xff]   ;;  %v3633_v59 = vld [vmem:[%s4545_s11 + $0x108] sm:$0xff]  }
 0x55c   :  { %1899 = vmatprep.subr.bf16.mxu0 %v3585_v45  ;;  %3260 = vmatprep.subr.bf16.mxu1 %v3614_v60  ;;  %v3629_v45 = vld [vmem:[%s4545_s11 + $0xb8] sm:$0xff]  }
 0x55f   :  { %1900 = vmatpush1.bf16.msra.mxu0 %v3583_v46  ;;  %3261 = vmatpush3.bf16.msra.mxu1 %v3616_v61  ;;  %v3630_v46 = vld [vmem:[%s4545_s11 + $0x140] sm:$0xff]   ;;  %v3634_v61 = vld [vmem:[%s4545_s11 + $0x150] sm:$0xff]  }
 0x560   :  { %1901 = vmatprep.subr.bf16.mxu0 %v3591_v47  ;;  %3262 = vmatprep.subr.bf16.mxu1 %v3618_v62  ;;  %v3635_v62 = vld [vmem:[%s4545_s11 + $0x110] sm:$0xff]  }
 0x563   :  { %1902 = vmatpush1.bf16.msra.mxu0 %v3589_v48  ;;  %3263 = vmatpush3.bf16.msra.mxu1 %v3620_v63  ;;  %v3636_v63 = vld [vmem:[%s4545_s11 + $0x158] sm:$0xff]  }
 0x564   :  { %1903 = vmatprep.subr.bf16.mxu0 %v3597_v49  ;;  %3264 = vmatprep.subr.bf16.mxu1 %v3622_v1  ;;  %v3637_v1 = vld [vmem:[%s4545_s11 + $0x118] sm:$0xff]  }
 0x567   :  { %1904 = vmatpush1.bf16.msra.mxu0 %v3595_v50  ;;  %3265 = vmatpush3.bf16.msra.mxu1 %v3624_v2  ;;  %v3638_v2 = vld [vmem:[%s4545_s11 + $0x160] sm:$0xff]  }
 0x568   :  { %3266 = vmatprep.subr.bf16.mxu1 %v3626_v42 }
 0x56a   :  { %1922 = vmatmul.mubr.bf16.vlgmr.msra.gmra.mrb[28].mxu0 %v1653_v51 }
 0x56b   :  { %2163 = vmatprep.mubr.f32.mxu0 %v3698_v0  ;;  %3267 = vmatpush3.bf16.msra.mxu1 %v3628_v43 }
 0x61d   :  { %v1802_v4 = vpop.f32.mrb[24].mxu0 }
 0x61e   :  { %v1804_v5 = vpop.f32.mrb[25].mxu0 }
 0x61f   :  { %v1806_v6 = vpop.f32.mrb[26].mxu0 }
 0x620   :  { %v1807_v9 = vpop.f32.mrb[27].mxu0  ;;  %v3641_v6 = vld [vmem:[%s4545_s11 + $0x128] sm:$0xff]  }
 0x621   :  { %v2062_v10 = vpop.f32.mrb[16].mxu1  ;;  %v3642_v9 = vld [vmem:[%s4545_s11 + $0x170] sm:$0xff]  }
 0x622   :  { %v2064_v13 = vpop.f32.mrb[17].mxu1 }
 0x623   :  { %v2066_v15 = vpop.f32.mrb[18].mxu1 }
 0x624   :  { %v2067_v16 = vpop.f32.mrb[19].mxu1  ;;  %v3645_v15 = vld [vmem:[%s4545_s11 + $0x138] sm:$0xff]  }
 0x63d   :  { %v1923_v3 = vpop.f32.mrb[28].mxu0 }
 0x63e   :  { %v1924_v7 = vadd.f32 %v1923_v3, %v1802_v4  ;;  %v1925_v18 = vpop.f32.mrb[29].mxu0  ;;  %v3639_v4 = vld [vmem:[%s4545_s11 + $0x120] sm:$0xff]  }
 0x63f   :  { %v1926_v19 = vadd.f32 %v1925_v18, %v1804_v5  ;;  %v1927_v20 = vpop.f32.mrb[30].mxu0  ;;  %v3640_v5 = vld [vmem:[%s4545_s11 + $0x168] sm:$0xff]  }
 0x640   :  { %v2069_v22 = vadd.f32 %v2062_v10, %v1924_v7  ;;  %v1928_v23 = vpop.f32.mrb[31].mxu0  ;;  %v3643_v10 = vld [vmem:[%s4545_s11 + $0x130] sm:$0xff]  }
 0x641   :  { %v2070_v24 = vadd.f32 %v2064_v13, %v1926_v19  ;;  %v3644_v13 = vld [vmem:[%s4545_s11 + $0x178] sm:$0xff]  }
 0x642   :  { %v2083_v25 = vadd.f32 %v2076_v8, %v2069_v22 }
 0x643   :  { %v2084_v26 = vadd.f32 %v2080_v21, %v2070_v24 }
 0x644   :  { %v2085_v29 = vmax.f32 %v2083_v25, 0.0 }
 0x645   :  { %v2086_v27 = vmax.f32 %v2084_v26, 0.0 }
 0x647   :  { %2099 = vmatprep.subr.mxu0 %v2086_v27 }
 0x648   :  { %2100 = vmatpush1.msra.mxu0 %v2085_v29  ;;  %v3159_v29 = vld [vmem:[%s4546_s12] ss:$0 sm:$0xff] }
 0x649   :  { %3044 = vmatmul.mubr.msk.f32.vlgmr.msra.gmra.mrb[32].mxu0 %vm1563_vm3, %v2087_v12  ;;  %3230 = vmatprep.subr.bf16.mxu0 %v3599_v28 }
 0x64a   :  { %2169 = vmatprep.mubr.f32.mxu0 %v3698_v0  ;;  %3231 = vmatpush3.bf16.msra.mxu0 %v3601_v11 }
 0x64b   :  { %3232 = vmatprep.subr.bf16.mxu0 %v3603_v14 }
 0x64d   :  { %3045 = vmatmul.mubr.msk.f32.gmra.mrb[34].mxu0 %vm1563_vm3, %v2088_v30 }
 0x64e   :  { %2175 = vmatprep.mubr.f32.mxu0 %v3698_v0  ;;  %3233 = vmatpush3.bf16.msra.mxu0 %v3605_v31  ;;  %v3613_v0 = vld [vmem:[%s4545_s11 + $0x98] sm:$0xff]  }
 0x64f   :  { %3234 = vmatprep.subr.bf16.mxu0 %v3607_v32 }
 0x651   :  { %3046 = vmatmul.mubr.msk.f32.gmra.mrb[36].mxu0 %vm1563_vm3, %v2089_v33 }
 0x652   :  { %3235 = vmatpush3.bf16.msra.mxu0 %v3609_v34 }
 0x653   :  { %3236 = vmatprep.subr.bf16.mxu0 %v3611_v35 }
 0x656   :  { %3237 = vmatpush3.bf16.msra.mxu0 %v3613_v0 }
 0x657   :  { %3238 = vmatprep.subr.bf16.mxu0 %v3615_v36 }
 0x65a   :  { %3239 = vmatpush3.bf16.msra.mxu0 %v3617_v37 }
 0x65b   :  { %3240 = vmatprep.subr.bf16.mxu0 %v3619_v38 }
 0x65e   :  { %3241 = vmatpush3.bf16.msra.mxu0 %v3621_v39 }
 0x65f   :  { %3242 = vmatprep.subr.bf16.mxu0 %v3623_v40 }
 0x662   :  { %3243 = vmatpush3.bf16.msra.mxu0 %v3625_v41 }
 0x663   :  { %3244 = vmatprep.subr.bf16.mxu0 %v3627_v44 }
 0x666   :  { %3245 = vmatpush3.bf16.msra.mxu0 %v3629_v45 }
 0x667   :  { %3274 = vmatprep.subr.bf16.mxu0 %v3630_v46 }
 0x71c   :  { %v2165_v47 = vpop.f32.mrb[32].mxu0 }
 0x71d   :  { %v2167_v48 = vpop.f32.mrb[33].mxu0  ;;  %v2182_v50 = vpack.c.bf16 %v2165_v47, %v2165_v47 }
 0x71e   :  { %v2183_v49 = vpack.c.bf16 %v2167_v48, %v2167_v48 }
 0x720   :  { %v2171_v51 = vpop.f32.mrb[34].mxu0  ;;  %2515 = vmatprep.mubr.bf16.mxu1 %v2183_v49 }
 0x721   :  { %v2173_v52 = vpop.f32.mrb[35].mxu0  ;;  %2516 = vmatmul.mubr.bf16.vlgmr.msra.gmra.mrb[20].mxu1 %v2182_v50  ;;  %v2216_v55 = vpack.c.bf16 %v2171_v51, %v2171_v51 }
 0x722   :  { %v2217_v53 = vpack.c.bf16 %v2173_v52, %v2173_v52 }
 0x724   :  { %2379 = vmatprep.mubr.bf16.mxu0 %v2217_v53  ;;  %v2177_v57 = vpop.f32.mrb[36].mxu0 }
 0x725   :  { %2380 = vmatmul.mubr.bf16.vlgmr.msra.gmra.mrb[40].mxu0 %v2216_v55  ;;  %v2179_v58 = vpop.f32.mrb[37].mxu0  ;;  %v2523_v16 = vpack.c.bf16 %v2177_v57, %v2177_v57 }
 0x726   :  { %3275 = vmatpush3.bf16.msra.mxu0 %v3631_v54  ;;  %v2524_v60 = vpack.c.bf16 %v2179_v58, %v2179_v58 }
 0x727   :  { %3276 = vmatprep.subr.bf16.mxu0 %v3632_v56 }
 0x728   :  { %2686 = vmatprep.mubr.bf16.mxu0 %v2524_v60 }
 0x72a   :  { %3277 = vmatpush3.bf16.msra.mxu0 %v3633_v59 }
 0x72b   :  { %3278 = vmatprep.subr.bf16.mxu0 %v3634_v61 }
 0x72e   :  { %3279 = vmatpush3.bf16.msra.mxu0 %v3635_v62 }
 0x72f   :  { %3280 = vmatprep.subr.bf16.mxu0 %v3636_v63 }
 0x732   :  { %3281 = vmatpush3.bf16.msra.mxu0 %v3637_v1 }
 0x733   :  { %3282 = vmatprep.subr.bf16.mxu0 %v3638_v2 }
 0x736   :  { %3283 = vmatpush3.bf16.msra.mxu0 %v3639_v4 }
 0x737   :  { %3284 = vmatprep.subr.bf16.mxu0 %v3640_v5 }
 0x73a   :  { %3285 = vmatpush3.bf16.msra.mxu0 %v3641_v6 }
 0x73b   :  { %3286 = vmatprep.subr.bf16.mxu0 %v3642_v9 }
 0x73e   :  { %3287 = vmatpush3.bf16.msra.mxu0 %v3643_v10 }
 0x73f   :  { %3288 = vmatprep.subr.bf16.mxu0 %v3644_v13 }
 0x742   :  { %3289 = vmatpush3.bf16.msra.mxu0 %v3645_v15 }
 0x745   :  { %2687 = vmatmul.mubr.bf16.vlgmr.msra.gmra.mrb[44].mxu0 %v2523_v16 }
 0x7f4   :  { %v3268_v17 = vpop.f32.mrb[20].mxu1 }
 0x7f5   :  { %v3269_v3 = vpop.f32.mrb[21].mxu1 }
 0x7f6   :  { %v3270_v7 = vadd.f32 %v3269_v3, %v3268_v17  ;;  %v3271_v8 = vpop.f32.mrb[22].mxu1 }
 0x7f7   :  { %v3272_v18 = vpop.f32.mrb[23].mxu1 }
 0x7f8   :  { %v3246_v19 = vpop.f32.mrb[40].mxu0 }
 0x7f9   :  { %v3247_v20 = vpop.f32.mrb[41].mxu0 }
 0x7fa   :  { %v3248_v21 = vadd.f32 %v3247_v20, %v3246_v19  ;;  %v3249_v22 = vpop.f32.mrb[42].mxu0 }
 0x7fb   :  { %v3250_v23 = vpop.f32.mrb[43].mxu0 }
 0x7fc   :  { %v2518_v24 = vadd.f32 %v3270_v7, %v3248_v21 }
 0x818   :  { %v3290_v25 = vpop.f32.mrb[44].mxu0 }
 0x819   :  { %v3291_v26 = vpop.f32.mrb[45].mxu0 }
 0x81a   :  { %v3292_v27 = vadd.f32 %v3291_v26, %v3290_v25  ;;  %v3293_v28 = vpop.f32.mrb[46].mxu0 }
 0x81b   :  { %v3294_v12 = vpop.f32.mrb[47].mxu0 }
 0x81c   :  { %v2694_v11 = vadd.f32 %v3292_v27, %v2518_v24 }
 0x81e   :  { %v2702_v14 = vadd.f32 %v3159_v29, %v2694_v11 }
 0x820   :  { %v2703_v30 = vmax.f32 %v2702_v14, 0.0 }
 0x822   :  { %2704 = vst.msk [vmem:[%s4547_s13] sm:$0xff] %vm945_vm1, %v2703_v30 }
 0x823   :  { %2709 = vsyncpa [#allocation3], 1 }
 0x824   :  { %2710 = vsyncpa [#allocation5], 1 }

</bundles_post_ra>
